<compile_context>
chip_gen: v7x
topology: tpu7x:2x2x1
jax: 0.10.0
libtpu: 0.0.40
codegen_flags: <defaults>
</compile_context>

<pallas_src>
import functools

import numpy as np
import jax
import jax.numpy as jnp
from jax import lax
from jax.experimental import pallas as pl
from jax.experimental.pallas import tpu as pltpu

EPS = 1e-5                      # torch.nn.GroupNorm default
MXU_DTYPE = jnp.bfloat16        # MXU operand dtype (f32 accumulation);
                                # set to jnp.float32 for bit-exact-vs-f32 runs.
_SQRT_2_OVER_PI = 0.7978845608028654


# ----------------------------- in-kernel math ------------------------------
def _gelu(x):
    # tanh-approximate GELU: a single EUP transcendental per element.
    # (max abs error vs exact erf-GELU ~1e-3; well inside the bf16 tolerance)
    return 0.5 * x * (1.0 + jnp.tanh(_SQRT_2_OVER_PI * (x + 0.044715 * x * x * x)))


def _groupnorm1(x, gamma, beta, inv_n, n_samples, hw):
    """GroupNorm(num_groups=1) applied independently per batch sample.

    Samples are concatenated along lanes, so each sample is a static,
    lane-aligned (C, hw) segment.  Lane-reduce to (C, 1) first, then a tiny
    final reduce; single fused pass (sum, sum(x^2)) + one FMA per element.
    (Single-pass E[x^2]-mu^2 is fine at the 2e-2 comparison tolerance.)"""
    outs = []
    for b in range(n_samples):
        seg = x[:, b * hw:(b + 1) * hw]                    # (C, hw), lane-aligned
        s1 = jnp.sum(seg, axis=1, keepdims=True)           # (C, 1)
        s2 = jnp.sum(seg * seg, axis=1, keepdims=True)     # (C, 1)
        mu = jnp.sum(s1) * inv_n
        var = jnp.sum(s2) * inv_n - mu * mu
        inv = lax.rsqrt(var + EPS)
        scale = gamma * inv                                # (C, 1)
        shift = beta - mu * scale                          # (C, 1)
        outs.append(seg * scale + shift)
    return outs[0] if n_samples == 1 else jnp.concatenate(outs, axis=1)


# --------------------------------- kernel ----------------------------------
def axial_shift_kernel(x_ref, w1_ref, w2_ref, w3_ref, vec_ref,
                       cmask_ref, slr_ref, std_ref, o_ref,
                       *, shifts, width, hw, n_samples, inv_n):
    C = w1_ref.shape[0]
    x = x_ref[...]                                         # (C, Nt) f32, Nt = n_samples*hw

    # Packed per-channel vectors (columns): [b1, g1, be1, b21, b22, g2, be2, b3]
    b1, g1, be1 = vec_ref[:, 0:1], vec_ref[:, 1:2], vec_ref[:, 2:3]
    b21, b22 = vec_ref[:, 3:4], vec_ref[:, 4:5]
    g2, be2, b3 = vec_ref[:, 5:6], vec_ref[:, 6:7], vec_ref[:, 7:8]

    # conv1 (1x1) + GroupNorm(1) + GELU
    h = jnp.dot(w1_ref[...], x.astype(w1_ref.dtype),
                preferred_element_type=jnp.float32) + b1
    h = _groupnorm1(h, g1, be1, inv_n, n_samples, hw)
    h = _gelu(h)

    # Axial shifts: static lane rolls (XLU) gated by factored masks.
    #   lr[c, n] = h[c, n - s(c)]    masked to 0 where (w - s(c)) is outside [0, W)
    #   td[c, n] = h[c, n - s(c)*W]  masked to 0 where (h - s(c)) is outside [0, H)
    # Lanes that wrap across a sample boundary are exactly the masked lanes,
    # so one roll over the whole (C, Nt) slab is correct for all Bt samples.
    nt = h.shape[1]
    lr = None
    td = None
    for k, s in enumerate(shifts):
        h_lr = h if s == 0 else pltpu.roll(h, shift=s % nt, axis=1)
        h_td = h if s == 0 else pltpu.roll(h, shift=(s * width) % nt, axis=1)
        c_lr = cmask_ref[k] * (slr_ref[k] * h_lr)          # (C,1)*((1,Nt)*(C,Nt))
        c_td = cmask_ref[k] * (std_ref[k] * h_td)
        lr = c_lr if lr is None else lr + c_lr
        td = c_td if td is None else td + c_td

    # conv2_1 / conv2_2 fused as one block-diagonal (2C, 2C) matmul.
    stacked = jnp.concatenate([lr, td], axis=0)            # (2C, Nt)
    z = jnp.dot(w2_ref[...], stacked.astype(w2_ref.dtype),
                preferred_element_type=jnp.float32)        # (2C, Nt)
    y = _gelu(z[:C, :] + b21) + _gelu(z[C:, :] + b22)      # x_lr + x_td

    # GroupNorm(1) + conv3 (1x1)
    y = _groupnorm1(y, g2, be2, inv_n, n_samples, hw)
    out = jnp.dot(w3_ref[...], y.astype(w3_ref.dtype),
                  preferred_element_type=jnp.float32) + b3
    o_ref[...] = out.astype(o_ref.dtype)


# ------------------------------ host helpers --------------------------------
def chunk_specs_fn(C, shift_size):
    """(start, end, shift) per channel chunk, exactly like torch.chunk + zip."""
    pad = shift_size // 2
    cs = -(-C // shift_size)                     # ceil, as torch.chunk does
    shifts = list(range(-pad, pad + 1))
    specs, c0, k = [], 0, 0
    while c0 < C:
        c1 = min(c0 + cs, C)
        specs.append((c0, c1, shifts[k]))
        c0, k = c1, k + 1
    return specs


def build_factored_masks(C, H, W, chunk_specs, samples_per_step):
    """Factored shift masks:
       cmask (nch, C, 1): chunk channel membership (shared by LR and TD)
       slr   (nch, 1, Bt*HW): per-chunk W-edge validity (pad+roll+narrow)
       std   (nch, 1, Bt*HW): per-chunk H-edge validity
    Spatial masks are periodic per sample, so they are simply tiled Bt times."""
    HW = H * W
    nt = samples_per_step * HW
    nch = len(chunk_specs)
    ww = np.arange(HW) % W
    hh = np.arange(HW) // W
    cmask = np.zeros((nch, C, 1), np.float32)
    slr = np.zeros((nch, 1, nt), np.float32)
    std = np.zeros((nch, 1, nt), np.float32)
    for k, (c0, c1, s) in enumerate(chunk_specs):
        cmask[k, c0:c1, 0] = 1.0
        lr_valid = (((ww - s) >= 0) & ((ww - s) < W)).astype(np.float32)
        td_valid = (((hh - s) >= 0) & ((hh - s) < H)).astype(np.float32)
        slr[k, 0, :] = np.tile(lr_valid, samples_per_step)
        std[k, 0, :] = np.tile(td_valid, samples_per_step)
    return jnp.asarray(cmask), jnp.asarray(slr), jnp.asarray(std)


def prepare_params(p, dtype=MXU_DTYPE):
    """One-time host prep: cast conv weights to the MXU dtype, fuse conv2_1 /
    conv2_2 into a block-diagonal (2C, 2C) weight, and pack the eight
    per-channel vectors into a single (C, 8) f32 array."""
    C = p["w1"].shape[0]
    zero = jnp.zeros((C, C), jnp.float32)
    w2 = jnp.concatenate(
        [jnp.concatenate([p["w21"], zero], axis=1),
         jnp.concatenate([zero, p["w22"]], axis=1)], axis=0)       # (2C, 2C)
    vecs = jnp.stack([p["b1"], p["g1"], p["be1"], p["b21"], p["b22"],
                      p["g2"], p["be2"], p["b3"]], axis=1).astype(jnp.float32)
    return {"w1": jnp.asarray(p["w1"], dtype),
            "w2": jnp.asarray(w2, dtype),
            "w3": jnp.asarray(p["w3"], dtype),
            "vecs": vecs}


# ------------------------------ host wrapper --------------------------------
def axial_shift_forward(x_nchw, prep, cmask, slr, std, chunk_specs,
                        samples_per_step):
    B, C, H, W = x_nchw.shape
    HW = H * W
    assert B % samples_per_step == 0, "B must be divisible by samples_per_step"
    Bt = samples_per_step
    Nt = Bt * HW
    nch = len(chunk_specs)
    shifts = tuple(s for (_c0, _c1, s) in chunk_specs)

    # NCHW -> (C, B*HW): one wrapper-side transpose (layout plumbing) so every
    # grid step sees a lane-dense (C, Bt*HW) slab and the matmul N is Bt*HW.
    x2 = jnp.transpose(x_nchw.reshape(B, C, HW), (1, 0, 2)).reshape(C, B * HW)

    kern = functools.partial(axial_shift_kernel, shifts=shifts, width=W, hw=HW,
                             n_samples=Bt, inv_n=1.0 / (C * HW))

    # Grid-invariant inputs (weights / packed vectors / masks).
    # NOTE(perf): at real sizes add pipeline_mode=pl.Buffered(1) here so these
    # are single-buffered (saves VMEM on v7x); omitted to keep one safe path.
    def inv(shape):
        return pl.BlockSpec(shape, lambda i: (0,) * len(shape))

    cost = pl.CostEstimate(
        flops=int(B * (12 * C * C * HW + 64 * C * HW)),
        transcendentals=int(B * 3 * C * HW),
        bytes_accessed=int(2 * B * C * HW * 4 + 6 * C * C * 2 + 8 * C * 4
                           + (B // Bt) * nch * (C + 2 * Nt) * 4),
    )

    out = pl.pallas_call(
        kern,
        out_shape=jax.ShapeDtypeStruct((C, B * HW), x_nchw.dtype),
        grid=(B // Bt,),
        in_specs=[
            pl.BlockSpec((C, Nt), lambda i: (0, i)),      # x: Bt samples / step
            inv((C, C)),                                  # w1
            inv((2 * C, 2 * C)),                          # w2 = blockdiag(w21, w22)
            inv((C, C)),                                  # w3
            inv((C, 8)),                                  # packed per-channel vectors
            inv((nch, C, 1)),                             # chunk channel masks
            inv((nch, 1, Nt)),                            # LR spatial validity
            inv((nch, 1, Nt)),                            # TD spatial validity
        ],
        out_specs=pl.BlockSpec((C, Nt), lambda i: (0, i)),
        compiler_params=pltpu.CompilerParams(
            dimension_semantics=("parallel",),            # >=2 steps -> both v7x TCs
            vmem_limit_bytes=32 * 1024 * 1024),           # re-derive at real sizes
        cost_estimate=cost,
    )(x2, prep["w1"], prep["w2"], prep["w3"], prep["vecs"], cmask, slr, std)

    return jnp.transpose(out.reshape(C, B, HW), (1, 0, 2)).reshape(B, C, H, W)


# --------------------------- params (synthetic) ------------------------------
def make_params(key, dim):
    ks = jax.random.split(key, 12)
    bound = 1.0 / np.sqrt(dim)
    conv_w = lambda k: jax.random.uniform(k, (dim, dim), jnp.float32, -bound, bound)
    conv_b = lambda k: jax.random.uniform(k, (dim,), jnp.float32, -bound, bound)
    return dict(
        w1=conv_w(ks[0]), b1=conv_b(ks[1]),
        w21=conv_w(ks[2]), b21=conv_b(ks[3]),
        w22=conv_w(ks[4]), b22=conv_b(ks[5]),
        w3=conv_w(ks[6]), b3=conv_b(ks[7]),
        g1=1.0 + 0.1 * jax.random.normal(ks[8], (dim,), jnp.float32),
        be1=0.1 * jax.random.normal(ks[9], (dim,), jnp.float32),
        g2=1.0 + 0.1 * jax.random.normal(ks[10], (dim,), jnp.float32),
        be2=0.1 * jax.random.normal(ks[11], (dim,), jnp.float32),
    )


# ------------------------ pure-JAX reference (NCHW) --------------------------
def reference_forward(x, p, shift_size, chunk_specs):
    B, C, H, W = x.shape
    pad = shift_size // 2
    hp = lax.Precision.HIGHEST

    def conv1x1(z, w, b):
        return jnp.einsum("bchw,oc->bohw", z, w, precision=hp) + b.reshape(1, C, 1, 1)

    def gn(z, g, be):
        mu = jnp.mean(z, axis=(1, 2, 3), keepdims=True)
        var = jnp.mean((z - mu) ** 2, axis=(1, 2, 3), keepdims=True)
        return (z - mu) / jnp.sqrt(var + EPS) * g.reshape(1, C, 1, 1) + be.reshape(1, C, 1, 1)

    gelu = lambda z: jax.nn.gelu(z, approximate=False)      # exact, like torch

    h = gelu(gn(conv1x1(x, p["w1"], p["b1"]), p["g1"], p["be1"]))
    hpd = jnp.pad(h, ((0, 0), (0, 0), (pad, pad), (pad, pad)))

    def shift(axis):
        pieces = [jnp.roll(hpd[:, c0:c1], s, axis=axis) for (c0, c1, s) in chunk_specs]
        cat = jnp.concatenate(pieces, axis=1)
        return cat[:, :, pad:pad + H, pad:pad + W]

    x_lr = gelu(conv1x1(shift(3), p["w21"], p["b21"]))
    x_td = gelu(conv1x1(shift(2), p["w22"], p["b22"]))
    y = gn(x_lr + x_td, p["g2"], p["be2"])
    return conv1x1(y, p["w3"], p["b3"])


# ---------------------------------- main -------------------------------------
if __name__ == "__main__":
    dim, shift_size = 16, 3
    B, H, W = 4, 16, 16
    samples_per_step = 2      # grid = (2,): per-step overhead amortized over 2
                              # samples while keeping >= 2 steps (v7x megacore)

    key = jax.random.PRNGKey(0)
    kx, kp = jax.random.split(key)
    x = jax.random.normal(kx, (B, dim, H, W), jnp.float32)   # NCHW, like torch
    params = make_params(kp, dim)

    specs = chunk_specs_fn(dim, shift_size)
    cmask, slr, std = build_factored_masks(dim, H, W, specs, samples_per_step)
    prep = prepare_params(params)                            # one-time weight prep

    out = axial_shift_forward(x, prep, cmask, slr, std, specs, samples_per_step)
    out = jax.block_until_ready(out)

    ref = jax.block_until_ready(reference_forward(x, params, shift_size, specs))
    assert out.shape == x.shape and out.dtype == x.dtype
    # bf16 MXU operands + tanh-approximate GELU vs the pure-f32 exact-erf
    # reference -> compare at a bf16-appropriate tolerance.
    np.testing.assert_allclose(np.asarray(out), np.asarray(ref),
                               rtol=2e-2, atol=2e-2)
    print("KERNEL_OK")
</pallas_src>

<mosaic_0001>
module attributes {stable_mosaic.version = 11 : i64} {
  func.func @axial_shift_kernel(%arg0: i32, %arg1: memref<16x512xf32, #tpu.memory_space<vmem>>, %arg2: memref<16x16xbf16, #tpu.memory_space<vmem>>, %arg3: memref<32x32xbf16, #tpu.memory_space<vmem>>, %arg4: memref<16x16xbf16, #tpu.memory_space<vmem>>, %arg5: memref<16x8xf32, #tpu.memory_space<vmem>>, %arg6: memref<3x16x1xf32, #tpu.memory_space<vmem>>, %arg7: memref<3x1x512xf32, #tpu.memory_space<vmem>>, %arg8: memref<3x1x512xf32, #tpu.memory_space<vmem>>, %arg9: memref<16x512xf32, #tpu.memory_space<vmem>>) attributes {dimension_semantics = [#tpu.dimension_semantics<parallel>], iteration_bounds = array<i64: 2>, scalar_prefetch = 0 : i64, scratch_operands = 0 : i64, tpu.core_type = #tpu.core_type<tc>, window_params = [{transform_indices = @transform_0, window_bounds = array<i64: 16, 512>}, {pipeline_mode = #tpu.pipeline_mode<synchronous>, transform_indices = @transform_1, window_bounds = array<i64: 16, 16>}, {pipeline_mode = #tpu.pipeline_mode<synchronous>, transform_indices = @transform_2, window_bounds = array<i64: 32, 32>}, {pipeline_mode = #tpu.pipeline_mode<synchronous>, transform_indices = @transform_3, window_bounds = array<i64: 16, 16>}, {pipeline_mode = #tpu.pipeline_mode<synchronous>, transform_indices = @transform_4, window_bounds = array<i64: 16, 8>}, {pipeline_mode = #tpu.pipeline_mode<synchronous>, transform_indices = @transform_5, window_bounds = array<i64: 3, 16, 1>}, {pipeline_mode = #tpu.pipeline_mode<synchronous>, transform_indices = @transform_6, window_bounds = array<i64: 3, 1, 512>}, {pipeline_mode = #tpu.pipeline_mode<synchronous>, transform_indices = @transform_7, window_bounds = array<i64: 3, 1, 512>}, {transform_indices = @transform_8, window_bounds = array<i64: 16, 512>}]} {
    %c0 = arith.constant 0 : index
    %c0_0 = arith.constant 0 : index
    %0 = vector.load %arg1[%c0, %c0_0] : memref<16x512xf32, #tpu.memory_space<vmem>>, vector<16x512xf32>
    %c0_1 = arith.constant 0 : index
    %c0_2 = arith.constant 0 : index
    %1 = vector.load %arg5[%c0_1, %c0_2] : memref<16x8xf32, #tpu.memory_space<vmem>>, vector<16x1xf32>
    %c0_3 = arith.constant 0 : index
    %c1 = arith.constant 1 : index
    %2 = vector.load %arg5[%c0_3, %c1] : memref<16x8xf32, #tpu.memory_space<vmem>>, vector<16x1xf32>
    %c0_4 = arith.constant 0 : index
    %c2 = arith.constant 2 : index
    %3 = vector.load %arg5[%c0_4, %c2] : memref<16x8xf32, #tpu.memory_space<vmem>>, vector<16x1xf32>
    %c0_5 = arith.constant 0 : index
    %c3 = arith.constant 3 : index
    %4 = vector.load %arg5[%c0_5, %c3] : memref<16x8xf32, #tpu.memory_space<vmem>>, vector<16x1xf32>
    %c0_6 = arith.constant 0 : index
    %c4 = arith.constant 4 : index
    %5 = vector.load %arg5[%c0_6, %c4] : memref<16x8xf32, #tpu.memory_space<vmem>>, vector<16x1xf32>
    %c0_7 = arith.constant 0 : index
    %c5 = arith.constant 5 : index
    %6 = vector.load %arg5[%c0_7, %c5] : memref<16x8xf32, #tpu.memory_space<vmem>>, vector<16x1xf32>
    %c0_8 = arith.constant 0 : index
    %c6 = arith.constant 6 : index
    %7 = vector.load %arg5[%c0_8, %c6] : memref<16x8xf32, #tpu.memory_space<vmem>>, vector<16x1xf32>
    %c0_9 = arith.constant 0 : index
    %c7 = arith.constant 7 : index
    %8 = vector.load %arg5[%c0_9, %c7] : memref<16x8xf32, #tpu.memory_space<vmem>>, vector<16x1xf32>
    %c0_10 = arith.constant 0 : index
    %c0_11 = arith.constant 0 : index
    %9 = vector.load %arg2[%c0_10, %c0_11] : memref<16x16xbf16, #tpu.memory_space<vmem>>, vector<16x16xbf16>
    %10 = arith.truncf %0 : vector<16x512xf32> to vector<16x512xbf16>
    %cst = arith.constant dense<0.000000e+00> : vector<16x512xf32>
    %11 = tpu.matmul %9, %10, %cst {dimension_numbers = #tpu.dot_dimension_numbers<[1], [0], [0], [1], [0, 0, 1, 1], [], []>} : vector<16x16xbf16>, vector<16x512xbf16>, vector<16x512xf32> -> vector<16x512xf32>
    %12 = vector.broadcast %1 : vector<16x1xf32> to vector<16x512xf32>
    %13 = arith.addf %11, %12 : vector<16x512xf32>
    %14 = vector.extract_strided_slice %13 {offsets = [0, 0], sizes = [16, 256], strides = [1, 1]} : vector<16x512xf32> to vector<16x256xf32>
    %cst_12 = arith.constant dense<0.000000e+00> : vector<16xf32>
    %15 = vector.multi_reduction <add>, %14, %cst_12 [1] : vector<16x256xf32> to vector<16xf32>
    %16 = vector.shape_cast %15 : vector<16xf32> to vector<16x1xf32>
    %17 = arith.mulf %14, %14 : vector<16x256xf32>
    %cst_13 = arith.constant dense<0.000000e+00> : vector<16xf32>
    %18 = vector.multi_reduction <add>, %17, %cst_13 [1] : vector<16x256xf32> to vector<16xf32>
    %19 = vector.shape_cast %18 : vector<16xf32> to vector<16x1xf32>
    %20 = vector.shape_cast %16 : vector<16x1xf32> to vector<1x16x1xf32>
    %cst_14 = arith.constant dense<0.000000e+00> : vector<1xf32>
    %21 = vector.multi_reduction <add>, %20, %cst_14 [1, 2] : vector<1x16x1xf32> to vector<1xf32>
    %22 = vector.shape_cast %21 : vector<1xf32> to vector<1x1x1xf32>
    %23 = vector.extract %22[0, 0, 0] : f32 from vector<1x1x1xf32>
    %cst_15 = arith.constant 2.44140625E-4 : f32
    %24 = arith.mulf %23, %cst_15 : f32
    %25 = vector.shape_cast %19 : vector<16x1xf32> to vector<1x16x1xf32>
    %cst_16 = arith.constant dense<0.000000e+00> : vector<1xf32>
    %26 = vector.multi_reduction <add>, %25, %cst_16 [1, 2] : vector<1x16x1xf32> to vector<1xf32>
    %27 = vector.shape_cast %26 : vector<1xf32> to vector<1x1x1xf32>
    %28 = vector.extract %27[0, 0, 0] : f32 from vector<1x1x1xf32>
    %cst_17 = arith.constant 2.44140625E-4 : f32
    %29 = arith.mulf %28, %cst_17 : f32
    %30 = arith.mulf %24, %24 : f32
    %31 = arith.subf %29, %30 : f32
    %cst_18 = arith.constant 9.99999974E-6 : f32
    %32 = arith.addf %31, %cst_18 : f32
    %33 = math.rsqrt %32 : f32
    %34 = vector.broadcast %33 : f32 to vector<16x1xf32>
    %35 = arith.mulf %2, %34 : vector<16x1xf32>
    %36 = vector.broadcast %24 : f32 to vector<16x1xf32>
    %37 = arith.mulf %36, %35 : vector<16x1xf32>
    %38 = arith.subf %3, %37 : vector<16x1xf32>
    %39 = vector.broadcast %35 : vector<16x1xf32> to vector<16x256xf32>
    %40 = arith.mulf %14, %39 : vector<16x256xf32>
    %41 = vector.broadcast %38 : vector<16x1xf32> to vector<16x256xf32>
    %42 = arith.addf %40, %41 : vector<16x256xf32>
    %43 = vector.extract_strided_slice %13 {offsets = [0, 256], sizes = [16, 256], strides = [1, 1]} : vector<16x512xf32> to vector<16x256xf32>
    %cst_19 = arith.constant dense<0.000000e+00> : vector<16xf32>
    %44 = vector.multi_reduction <add>, %43, %cst_19 [1] : vector<16x256xf32> to vector<16xf32>
    %45 = vector.shape_cast %44 : vector<16xf32> to vector<16x1xf32>
    %46 = arith.mulf %43, %43 : vector<16x256xf32>
    %cst_20 = arith.constant dense<0.000000e+00> : vector<16xf32>
    %47 = vector.multi_reduction <add>, %46, %cst_20 [1] : vector<16x256xf32> to vector<16xf32>
    %48 = vector.shape_cast %47 : vector<16xf32> to vector<16x1xf32>
    %49 = vector.shape_cast %45 : vector<16x1xf32> to vector<1x16x1xf32>
    %cst_21 = arith.constant dense<0.000000e+00> : vector<1xf32>
    %50 = vector.multi_reduction <add>, %49, %cst_21 [1, 2] : vector<1x16x1xf32> to vector<1xf32>
    %51 = vector.shape_cast %50 : vector<1xf32> to vector<1x1x1xf32>
    %52 = vector.extract %51[0, 0, 0] : f32 from vector<1x1x1xf32>
    %cst_22 = arith.constant 2.44140625E-4 : f32
    %53 = arith.mulf %52, %cst_22 : f32
    %54 = vector.shape_cast %48 : vector<16x1xf32> to vector<1x16x1xf32>
    %cst_23 = arith.constant dense<0.000000e+00> : vector<1xf32>
    %55 = vector.multi_reduction <add>, %54, %cst_23 [1, 2] : vector<1x16x1xf32> to vector<1xf32>
    %56 = vector.shape_cast %55 : vector<1xf32> to vector<1x1x1xf32>
    %57 = vector.extract %56[0, 0, 0] : f32 from vector<1x1x1xf32>
    %cst_24 = arith.constant 2.44140625E-4 : f32
    %58 = arith.mulf %57, %cst_24 : f32
    %59 = arith.mulf %53, %53 : f32
    %60 = arith.subf %58, %59 : f32
    %cst_25 = arith.constant 9.99999974E-6 : f32
    %61 = arith.addf %60, %cst_25 : f32
    %62 = math.rsqrt %61 : f32
    %63 = vector.broadcast %62 : f32 to vector<16x1xf32>
    %64 = arith.mulf %2, %63 : vector<16x1xf32>
    %65 = vector.broadcast %53 : f32 to vector<16x1xf32>
    %66 = arith.mulf %65, %64 : vector<16x1xf32>
    %67 = arith.subf %3, %66 : vector<16x1xf32>
    %68 = vector.broadcast %64 : vector<16x1xf32> to vector<16x256xf32>
    %69 = arith.mulf %43, %68 : vector<16x256xf32>
    %70 = vector.broadcast %67 : vector<16x1xf32> to vector<16x256xf32>
    %71 = arith.addf %69, %70 : vector<16x256xf32>
    %72 = tpu.concatenate %42, %71 in 1 : vector<16x256xf32>, vector<16x256xf32> -> vector<16x512xf32>
    %cst_26 = arith.constant 5.000000e-01 : f32
    %73 = vector.broadcast %cst_26 : f32 to vector<16x512xf32>
    %74 = arith.mulf %73, %72 : vector<16x512xf32>
    %cst_27 = arith.constant 4.471500e-02 : f32
    %75 = vector.broadcast %cst_27 : f32 to vector<16x512xf32>
    %76 = arith.mulf %75, %72 : vector<16x512xf32>
    %77 = arith.mulf %76, %72 : vector<16x512xf32>
    %78 = arith.mulf %77, %72 : vector<16x512xf32>
    %79 = arith.addf %72, %78 : vector<16x512xf32>
    %cst_28 = arith.constant 0.797884583 : f32
    %80 = vector.broadcast %cst_28 : f32 to vector<16x512xf32>
    %81 = arith.mulf %80, %79 : vector<16x512xf32>
    %82 = math.tanh %81 : vector<16x512xf32>
    %cst_29 = arith.constant 1.000000e+00 : f32
    %83 = vector.broadcast %cst_29 : f32 to vector<16x512xf32>
    %84 = arith.addf %83, %82 : vector<16x512xf32>
    %85 = arith.mulf %74, %84 : vector<16x512xf32>
    %c511_i32 = arith.constant 511 : i32
    %86 = tpu.dynamic_rotate %85 by %c511_i32 dim 1 : vector<16x512xf32>, i32 -> vector<16x512xf32>
    %c496_i32 = arith.constant 496 : i32
    %87 = tpu.dynamic_rotate %85 by %c496_i32 dim 1 : vector<16x512xf32>, i32 -> vector<16x512xf32>
    %c0_30 = arith.constant 0 : index
    %c0_31 = arith.constant 0 : index
    %c0_32 = arith.constant 0 : index
    %88 = vector.load %arg6[%c0_30, %c0_31, %c0_32] : memref<3x16x1xf32, #tpu.memory_space<vmem>>, vector<1x16x1xf32>
    %89 = vector.shape_cast %88 : vector<1x16x1xf32> to vector<16x1xf32>
    %c0_33 = arith.constant 0 : index
    %c0_34 = arith.constant 0 : index
    %c0_35 = arith.constant 0 : index
    %90 = vector.load %arg7[%c0_33, %c0_34, %c0_35] : memref<3x1x512xf32, #tpu.memory_space<vmem>>, vector<1x1x512xf32>
    %91 = vector.shape_cast %90 : vector<1x1x512xf32> to vector<1x512xf32>
    %92 = vector.broadcast %91 : vector<1x512xf32> to vector<16x512xf32>
    %93 = arith.mulf %92, %86 : vector<16x512xf32>
    %94 = vector.broadcast %89 : vector<16x1xf32> to vector<16x512xf32>
    %95 = arith.mulf %94, %93 : vector<16x512xf32>
    %c0_36 = arith.constant 0 : index
    %c0_37 = arith.constant 0 : index
    %c0_38 = arith.constant 0 : index
    %96 = vector.load %arg6[%c0_36, %c0_37, %c0_38] : memref<3x16x1xf32, #tpu.memory_space<vmem>>, vector<1x16x1xf32>
    %97 = vector.shape_cast %96 : vector<1x16x1xf32> to vector<16x1xf32>
    %c0_39 = arith.constant 0 : index
    %c0_40 = arith.constant 0 : index
    %c0_41 = arith.constant 0 : index
    %98 = vector.load %arg8[%c0_39, %c0_40, %c0_41] : memref<3x1x512xf32, #tpu.memory_space<vmem>>, vector<1x1x512xf32>
    %99 = vector.shape_cast %98 : vector<1x1x512xf32> to vector<1x512xf32>
    %100 = vector.broadcast %99 : vector<1x512xf32> to vector<16x512xf32>
    %101 = arith.mulf %100, %87 : vector<16x512xf32>
    %102 = vector.broadcast %97 : vector<16x1xf32> to vector<16x512xf32>
    %103 = arith.mulf %102, %101 : vector<16x512xf32>
    %c1_42 = arith.constant 1 : index
    %c0_43 = arith.constant 0 : index
    %c0_44 = arith.constant 0 : index
    %104 = vector.load %arg6[%c1_42, %c0_43, %c0_44] : memref<3x16x1xf32, #tpu.memory_space<vmem>>, vector<1x16x1xf32>
    %105 = vector.shape_cast %104 : vector<1x16x1xf32> to vector<16x1xf32>
    %c1_45 = arith.constant 1 : index
    %c0_46 = arith.constant 0 : index
    %c0_47 = arith.constant 0 : index
    %106 = vector.load %arg7[%c1_45, %c0_46, %c0_47] : memref<3x1x512xf32, #tpu.memory_space<vmem>>, vector<1x1x512xf32>
    %107 = vector.shape_cast %106 : vector<1x1x512xf32> to vector<1x512xf32>
    %108 = vector.broadcast %107 : vector<1x512xf32> to vector<16x512xf32>
    %109 = arith.mulf %108, %85 : vector<16x512xf32>
    %110 = vector.broadcast %105 : vector<16x1xf32> to vector<16x512xf32>
    %111 = arith.mulf %110, %109 : vector<16x512xf32>
    %c1_48 = arith.constant 1 : index
    %c0_49 = arith.constant 0 : index
    %c0_50 = arith.constant 0 : index
    %112 = vector.load %arg6[%c1_48, %c0_49, %c0_50] : memref<3x16x1xf32, #tpu.memory_space<vmem>>, vector<1x16x1xf32>
    %113 = vector.shape_cast %112 : vector<1x16x1xf32> to vector<16x1xf32>
    %c1_51 = arith.constant 1 : index
    %c0_52 = arith.constant 0 : index
    %c0_53 = arith.constant 0 : index
    %114 = vector.load %arg8[%c1_51, %c0_52, %c0_53] : memref<3x1x512xf32, #tpu.memory_space<vmem>>, vector<1x1x512xf32>
    %115 = vector.shape_cast %114 : vector<1x1x512xf32> to vector<1x512xf32>
    %116 = vector.broadcast %115 : vector<1x512xf32> to vector<16x512xf32>
    %117 = arith.mulf %116, %85 : vector<16x512xf32>
    %118 = vector.broadcast %113 : vector<16x1xf32> to vector<16x512xf32>
    %119 = arith.mulf %118, %117 : vector<16x512xf32>
    %120 = arith.addf %95, %111 : vector<16x512xf32>
    %121 = arith.addf %103, %119 : vector<16x512xf32>
    %c1_i32 = arith.constant 1 : i32
    %122 = tpu.dynamic_rotate %85 by %c1_i32 dim 1 : vector<16x512xf32>, i32 -> vector<16x512xf32>
    %c16_i32 = arith.constant 16 : i32
    %123 = tpu.dynamic_rotate %85 by %c16_i32 dim 1 : vector<16x512xf32>, i32 -> vector<16x512xf32>
    %c2_54 = arith.constant 2 : index
    %c0_55 = arith.constant 0 : index
    %c0_56 = arith.constant 0 : index
    %124 = vector.load %arg6[%c2_54, %c0_55, %c0_56] : memref<3x16x1xf32, #tpu.memory_space<vmem>>, vector<1x16x1xf32>
    %125 = vector.shape_cast %124 : vector<1x16x1xf32> to vector<16x1xf32>
    %c2_57 = arith.constant 2 : index
    %c0_58 = arith.constant 0 : index
    %c0_59 = arith.constant 0 : index
    %126 = vector.load %arg7[%c2_57, %c0_58, %c0_59] : memref<3x1x512xf32, #tpu.memory_space<vmem>>, vector<1x1x512xf32>
    %127 = vector.shape_cast %126 : vector<1x1x512xf32> to vector<1x512xf32>
    %128 = vector.broadcast %127 : vector<1x512xf32> to vector<16x512xf32>
    %129 = arith.mulf %128, %122 : vector<16x512xf32>
    %130 = vector.broadcast %125 : vector<16x1xf32> to vector<16x512xf32>
    %131 = arith.mulf %130, %129 : vector<16x512xf32>
    %c2_60 = arith.constant 2 : index
    %c0_61 = arith.constant 0 : index
    %c0_62 = arith.constant 0 : index
    %132 = vector.load %arg6[%c2_60, %c0_61, %c0_62] : memref<3x16x1xf32, #tpu.memory_space<vmem>>, vector<1x16x1xf32>
    %133 = vector.shape_cast %132 : vector<1x16x1xf32> to vector<16x1xf32>
    %c2_63 = arith.constant 2 : index
    %c0_64 = arith.constant 0 : index
    %c0_65 = arith.constant 0 : index
    %134 = vector.load %arg8[%c2_63, %c0_64, %c0_65] : memref<3x1x512xf32, #tpu.memory_space<vmem>>, vector<1x1x512xf32>
    %135 = vector.shape_cast %134 : vector<1x1x512xf32> to vector<1x512xf32>
    %136 = vector.broadcast %135 : vector<1x512xf32> to vector<16x512xf32>
    %137 = arith.mulf %136, %123 : vector<16x512xf32>
    %138 = vector.broadcast %133 : vector<16x1xf32> to vector<16x512xf32>
    %139 = arith.mulf %138, %137 : vector<16x512xf32>
    %140 = arith.addf %120, %131 : vector<16x512xf32>
    %141 = arith.addf %121, %139 : vector<16x512xf32>
    %142 = tpu.concatenate %140, %141 in 0 : vector<16x512xf32>, vector<16x512xf32> -> vector<32x512xf32>
    %c0_66 = arith.constant 0 : index
    %c0_67 = arith.constant 0 : index
    %143 = vector.load %arg3[%c0_66, %c0_67] : memref<32x32xbf16, #tpu.memory_space<vmem>>, vector<32x32xbf16>
    %144 = arith.truncf %142 : vector<32x512xf32> to vector<32x512xbf16>
    %cst_68 = arith.constant dense<0.000000e+00> : vector<32x512xf32>
    %145 = tpu.matmul %143, %144, %cst_68 {dimension_numbers = #tpu.dot_dimension_numbers<[1], [0], [0], [1], [0, 0, 1, 1], [], []>} : vector<32x32xbf16>, vector<32x512xbf16>, vector<32x512xf32> -> vector<32x512xf32>
    %146 = vector.extract_strided_slice %145 {offsets = [0, 0], sizes = [16, 512], strides = [1, 1]} : vector<32x512xf32> to vector<16x512xf32>
    %147 = vector.broadcast %4 : vector<16x1xf32> to vector<16x512xf32>
    %148 = arith.addf %146, %147 : vector<16x512xf32>
    %cst_69 = arith.constant 5.000000e-01 : f32
    %149 = vector.broadcast %cst_69 : f32 to vector<16x512xf32>
    %150 = arith.mulf %149, %148 : vector<16x512xf32>
    %cst_70 = arith.constant 4.471500e-02 : f32
    %151 = vector.broadcast %cst_70 : f32 to vector<16x512xf32>
    %152 = arith.mulf %151, %148 : vector<16x512xf32>
    %153 = arith.mulf %152, %148 : vector<16x512xf32>
    %154 = arith.mulf %153, %148 : vector<16x512xf32>
    %155 = arith.addf %148, %154 : vector<16x512xf32>
    %cst_71 = arith.constant 0.797884583 : f32
    %156 = vector.broadcast %cst_71 : f32 to vector<16x512xf32>
    %157 = arith.mulf %156, %155 : vector<16x512xf32>
    %158 = math.tanh %157 : vector<16x512xf32>
    %cst_72 = arith.constant 1.000000e+00 : f32
    %159 = vector.broadcast %cst_72 : f32 to vector<16x512xf32>
    %160 = arith.addf %159, %158 : vector<16x512xf32>
    %161 = arith.mulf %150, %160 : vector<16x512xf32>
    %162 = vector.extract_strided_slice %145 {offsets = [16, 0], sizes = [16, 512], strides = [1, 1]} : vector<32x512xf32> to vector<16x512xf32>
    %163 = vector.broadcast %5 : vector<16x1xf32> to vector<16x512xf32>
    %164 = arith.addf %162, %163 : vector<16x512xf32>
    %cst_73 = arith.constant 5.000000e-01 : f32
    %165 = vector.broadcast %cst_73 : f32 to vector<16x512xf32>
    %166 = arith.mulf %165, %164 : vector<16x512xf32>
    %cst_74 = arith.constant 4.471500e-02 : f32
    %167 = vector.broadcast %cst_74 : f32 to vector<16x512xf32>
    %168 = arith.mulf %167, %164 : vector<16x512xf32>
    %169 = arith.mulf %168, %164 : vector<16x512xf32>
    %170 = arith.mulf %169, %164 : vector<16x512xf32>
    %171 = arith.addf %164, %170 : vector<16x512xf32>
    %cst_75 = arith.constant 0.797884583 : f32
    %172 = vector.broadcast %cst_75 : f32 to vector<16x512xf32>
    %173 = arith.mulf %172, %171 : vector<16x512xf32>
    %174 = math.tanh %173 : vector<16x512xf32>
    %cst_76 = arith.constant 1.000000e+00 : f32
    %175 = vector.broadcast %cst_76 : f32 to vector<16x512xf32>
    %176 = arith.addf %175, %174 : vector<16x512xf32>
    %177 = arith.mulf %166, %176 : vector<16x512xf32>
    %178 = arith.addf %161, %177 : vector<16x512xf32>
    %179 = vector.extract_strided_slice %178 {offsets = [0, 0], sizes = [16, 256], strides = [1, 1]} : vector<16x512xf32> to vector<16x256xf32>
    %cst_77 = arith.constant dense<0.000000e+00> : vector<16xf32>
    %180 = vector.multi_reduction <add>, %179, %cst_77 [1] : vector<16x256xf32> to vector<16xf32>
    %181 = vector.shape_cast %180 : vector<16xf32> to vector<16x1xf32>
    %182 = arith.mulf %179, %179 : vector<16x256xf32>
    %cst_78 = arith.constant dense<0.000000e+00> : vector<16xf32>
    %183 = vector.multi_reduction <add>, %182, %cst_78 [1] : vector<16x256xf32> to vector<16xf32>
    %184 = vector.shape_cast %183 : vector<16xf32> to vector<16x1xf32>
    %185 = vector.shape_cast %181 : vector<16x1xf32> to vector<1x16x1xf32>
    %cst_79 = arith.constant dense<0.000000e+00> : vector<1xf32>
    %186 = vector.multi_reduction <add>, %185, %cst_79 [1, 2] : vector<1x16x1xf32> to vector<1xf32>
    %187 = vector.shape_cast %186 : vector<1xf32> to vector<1x1x1xf32>
    %188 = vector.extract %187[0, 0, 0] : f32 from vector<1x1x1xf32>
    %cst_80 = arith.constant 2.44140625E-4 : f32
    %189 = arith.mulf %188, %cst_80 : f32
    %190 = vector.shape_cast %184 : vector<16x1xf32> to vector<1x16x1xf32>
    %cst_81 = arith.constant dense<0.000000e+00> : vector<1xf32>
    %191 = vector.multi_reduction <add>, %190, %cst_81 [1, 2] : vector<1x16x1xf32> to vector<1xf32>
    %192 = vector.shape_cast %191 : vector<1xf32> to vector<1x1x1xf32>
    %193 = vector.extract %192[0, 0, 0] : f32 from vector<1x1x1xf32>
    %cst_82 = arith.constant 2.44140625E-4 : f32
    %194 = arith.mulf %193, %cst_82 : f32
    %195 = arith.mulf %189, %189 : f32
    %196 = arith.subf %194, %195 : f32
    %cst_83 = arith.constant 9.99999974E-6 : f32
    %197 = arith.addf %196, %cst_83 : f32
    %198 = math.rsqrt %197 : f32
    %199 = vector.broadcast %198 : f32 to vector<16x1xf32>
    %200 = arith.mulf %6, %199 : vector<16x1xf32>
    %201 = vector.broadcast %189 : f32 to vector<16x1xf32>
    %202 = arith.mulf %201, %200 : vector<16x1xf32>
    %203 = arith.subf %7, %202 : vector<16x1xf32>
    %204 = vector.broadcast %200 : vector<16x1xf32> to vector<16x256xf32>
    %205 = arith.mulf %179, %204 : vector<16x256xf32>
    %206 = vector.broadcast %203 : vector<16x1xf32> to vector<16x256xf32>
    %207 = arith.addf %205, %206 : vector<16x256xf32>
    %208 = vector.extract_strided_slice %178 {offsets = [0, 256], sizes = [16, 256], strides = [1, 1]} : vector<16x512xf32> to vector<16x256xf32>
    %cst_84 = arith.constant dense<0.000000e+00> : vector<16xf32>
    %209 = vector.multi_reduction <add>, %208, %cst_84 [1] : vector<16x256xf32> to vector<16xf32>
    %210 = vector.shape_cast %209 : vector<16xf32> to vector<16x1xf32>
    %211 = arith.mulf %208, %208 : vector<16x256xf32>
    %cst_85 = arith.constant dense<0.000000e+00> : vector<16xf32>
    %212 = vector.multi_reduction <add>, %211, %cst_85 [1] : vector<16x256xf32> to vector<16xf32>
    %213 = vector.shape_cast %212 : vector<16xf32> to vector<16x1xf32>
    %214 = vector.shape_cast %210 : vector<16x1xf32> to vector<1x16x1xf32>
    %cst_86 = arith.constant dense<0.000000e+00> : vector<1xf32>
    %215 = vector.multi_reduction <add>, %214, %cst_86 [1, 2] : vector<1x16x1xf32> to vector<1xf32>
    %216 = vector.shape_cast %215 : vector<1xf32> to vector<1x1x1xf32>
    %217 = vector.extract %216[0, 0, 0] : f32 from vector<1x1x1xf32>
    %cst_87 = arith.constant 2.44140625E-4 : f32
    %218 = arith.mulf %217, %cst_87 : f32
    %219 = vector.shape_cast %213 : vector<16x1xf32> to vector<1x16x1xf32>
    %cst_88 = arith.constant dense<0.000000e+00> : vector<1xf32>
    %220 = vector.multi_reduction <add>, %219, %cst_88 [1, 2] : vector<1x16x1xf32> to vector<1xf32>
    %221 = vector.shape_cast %220 : vector<1xf32> to vector<1x1x1xf32>
    %222 = vector.extract %221[0, 0, 0] : f32 from vector<1x1x1xf32>
    %cst_89 = arith.constant 2.44140625E-4 : f32
    %223 = arith.mulf %222, %cst_89 : f32
    %224 = arith.mulf %218, %218 : f32
    %225 = arith.subf %223, %224 : f32
    %cst_90 = arith.constant 9.99999974E-6 : f32
    %226 = arith.addf %225, %cst_90 : f32
    %227 = math.rsqrt %226 : f32
    %228 = vector.broadcast %227 : f32 to vector<16x1xf32>
    %229 = arith.mulf %6, %228 : vector<16x1xf32>
    %230 = vector.broadcast %218 : f32 to vector<16x1xf32>
    %231 = arith.mulf %230, %229 : vector<16x1xf32>
    %232 = arith.subf %7, %231 : vector<16x1xf32>
    %233 = vector.broadcast %229 : vector<16x1xf32> to vector<16x256xf32>
    %234 = arith.mulf %208, %233 : vector<16x256xf32>
    %235 = vector.broadcast %232 : vector<16x1xf32> to vector<16x256xf32>
    %236 = arith.addf %234, %235 : vector<16x256xf32>
    %237 = tpu.concatenate %207, %236 in 1 : vector<16x256xf32>, vector<16x256xf32> -> vector<16x512xf32>
    %c0_91 = arith.constant 0 : index
    %c0_92 = arith.constant 0 : index
    %238 = vector.load %arg4[%c0_91, %c0_92] : memref<16x16xbf16, #tpu.memory_space<vmem>>, vector<16x16xbf16>
    %239 = arith.truncf %237 : vector<16x512xf32> to vector<16x512xbf16>
    %cst_93 = arith.constant dense<0.000000e+00> : vector<16x512xf32>
    %240 = tpu.matmul %238, %239, %cst_93 {dimension_numbers = #tpu.dot_dimension_numbers<[1], [0], [0], [1], [0, 0, 1, 1], [], []>} : vector<16x16xbf16>, vector<16x512xbf16>, vector<16x512xf32> -> vector<16x512xf32>
    %241 = vector.broadcast %8 : vector<16x1xf32> to vector<16x512xf32>
    %242 = arith.addf %240, %241 : vector<16x512xf32>
    %c0_94 = arith.constant 0 : index
    %c0_95 = arith.constant 0 : index
    %243 = vector.load %arg9[%c0_94, %c0_95] : memref<16x512xf32, #tpu.memory_space<vmem>>, vector<16x512xf32>
    tpu.vector_store %arg9[%c0_94, %c0_95], %242 {strides = array<i32>} : memref<16x512xf32, #tpu.memory_space<vmem>>, vector<16x512xf32>,
    return
  }
  func.func @transform_0(%arg0: i32) -> (i32, i32) {
    %c0_i32 = arith.constant 0 : i32
    %c0_i32_0 = arith.constant 0 : i32
    return %c0_i32, %arg0 : i32, i32
  }
  func.func @transform_1(%arg0: i32) -> (i32, i32) {
    %c0_i32 = arith.constant 0 : i32
    %c0_i32_0 = arith.constant 0 : i32
    %c0_i32_1 = arith.constant 0 : i32
    return %c0_i32, %c0_i32_0 : i32, i32
  }
  func.func @transform_2(%arg0: i32) -> (i32, i32) {
    %c0_i32 = arith.constant 0 : i32
    %c0_i32_0 = arith.constant 0 : i32
    %c0_i32_1 = arith.constant 0 : i32
    return %c0_i32, %c0_i32_0 : i32, i32
  }
  func.func @transform_3(%arg0: i32) -> (i32, i32) {
    %c0_i32 = arith.constant 0 : i32
    %c0_i32_0 = arith.constant 0 : i32
    %c0_i32_1 = arith.constant 0 : i32
    return %c0_i32, %c0_i32_0 : i32, i32
  }
  func.func @transform_4(%arg0: i32) -> (i32, i32) {
    %c0_i32 = arith.constant 0 : i32
    %c0_i32_0 = arith.constant 0 : i32
    %c0_i32_1 = arith.constant 0 : i32
    return %c0_i32, %c0_i32_0 : i32, i32
  }
  func.func @transform_5(%arg0: i32) -> (i32, i32, i32) {
    %c0_i32 = arith.constant 0 : i32
    %c0_i32_0 = arith.constant 0 : i32
    %c0_i32_1 = arith.constant 0 : i32
    %c0_i32_2 = arith.constant 0 : i32
    return %c0_i32, %c0_i32_0, %c0_i32_1 : i32, i32, i32
  }
  func.func @transform_6(%arg0: i32) -> (i32, i32, i32) {
    %c0_i32 = arith.constant 0 : i32
    %c0_i32_0 = arith.constant 0 : i32
    %c0_i32_1 = arith.constant 0 : i32
    %c0_i32_2 = arith.constant 0 : i32
    return %c0_i32, %c0_i32_0, %c0_i32_1 : i32, i32, i32
  }
  func.func @transform_7(%arg0: i32) -> (i32, i32, i32) {
    %c0_i32 = arith.constant 0 : i32
    %c0_i32_0 = arith.constant 0 : i32
    %c0_i32_1 = arith.constant 0 : i32
    %c0_i32_2 = arith.constant 0 : i32
    return %c0_i32, %c0_i32_0, %c0_i32_1 : i32, i32, i32
  }
  func.func @transform_8(%arg0: i32) -> (i32, i32) {
    %c0_i32 = arith.constant 0 : i32
    %c0_i32_0 = arith.constant 0 : i32
    return %c0_i32, %arg0 : i32, i32
  }
}

</mosaic_0001>

<bundles_post_ra>
// kernel: tpu_custom_call.1
= control target key start
LH: loop header
LB: loop body
LE: loop exit
PB: predicated region body
PF: predicated region fallthrough
CT: control target
= control target key end

     0   :  { %13 = vsyncpa [#allocation3], 0  ;;  %s3143_s0 = inlined_call_operand.hbm [shape: f32[16,1024], index: 0, kind: input, shape index: {}]   ;;  %s3144_s1 = inlined_call_operand.vmem [shape: bf16[16,16], index: 1, kind: input, shape index: {}]   ;;  %s3145_s2 = inlined_call_operand.vmem [shape: bf16[32,32], index: 2, kind: input, shape index: {}]   ;;  %s3146_s3 = inlined_call_operand.vmem [shape: bf16[16,16], index: 3, kind: input, shape index: {}]   ;;  %s3147_s4 = inlined_call_operand.vmem [shape: f32[16,8], index: 4, kind: input, shape index: {}]   ;;  %s3148_s5 = inlined_call_operand.vmem [shape: f32[3,16,1], index: 5, kind: input, shape index: {}]   ;;  %s3149_s6 = inlined_call_operand.vmem [shape: f32[3,1,512], index: 6, kind: input, shape index: {}]   ;;  %s3150_s7 = inlined_call_operand.vmem [shape: f32[3,1,512], index: 7, kind: input, shape index: {}]   ;;  %s3151_s8 = inlined_call_operand.hbm [shape: f32[16,1024], index: 8, kind: output, shape index: {}]  }
   0x1   :  { %15 = vsyncpa [#allocation3 + $0x1], 0 }
   0x2   :  { %16 = vsyncpa [#allocation4], 0 }
   0x3   :  { %18 = vsyncpa [#allocation4 + $0x1], 0  ;;  %s2180_s27 = smov 0   ;;  %s2182_s28 = smov 0  }
   0x4   :  { %s2184_s29 = smov 0   ;;  %s2186_s30 = smov 0  }
   0x5 LB: > { %s2201_s9 = sadd.s32 4294967295, %s2113_s30   ;;  %s1815_s10 = sadd.s32 4294967294, %s2113_s30   ;;  %s2113_s30 = sphi %s2186_s30, %s3191_s30   ;;  %s2109_s29 = sphi %s2184_s29, %s3190_s29   ;;  %s2105_s28 = sphi %s2182_s28, %s3189_s28   ;;  %s2101_s27 = sphi %s2180_s27, %s3188_s27  }
   0x6   : > { %s2205_s11 = sadd.s32 1, %s2113_s30   ;;  %s31_s12 = sadd.s32 1, %s2109_s29 }
   0x7   : > { %s28_s13 = ssub.s32 %s2113_s30, %s2205_s11  ;;  %p38_p0 = scmp.ne.s32.totalorder %s2109_s29, %s2105_s28 }
   0x8   : > { %p29_p1 = scmp.eq.s32.totalorder %s28_s13, 0  ;;  %p39_p2 = scmp.eq.s32.totalorder %s2113_s30, 0 }
   0x9   : > { %p44_p3 = scmp.ne.s32.totalorder %s2105_s28, %s2101_s27  ;;  %p45_p4 = scmp.eq.s32.totalorder %s2201_s9, 0 }
   0xa   : > { %s2217_s14 = scalar_select %p29_p1, %s2109_s29, %s31_s12  }
   0xb   : > { %p2219_p5 = por %p39_p2, %p38_p0  ;;  %p2223_p6 = por %p45_p4, %p44_p3 }
   0xc   : > { %p215_p7 = scmp.eq.s32.totalorder %s2201_s9, 1  ;;  %p221_p8 = scmp.eq.s32.totalorder %s1815_s10, 1 }
   0xd   : > { %p1887_p10 = scmp.lt.s32.totalorder %s2113_s30, 2  ;;  %s262_s19 = sand.u32 1, %s2109_s29  }
   0xe   : > { %p2230_p11 = por %p215_p7, %p38_p0  ;;  %p2234_p12 = por %p221_p8, %p44_p3 }
   0xf   : > { %s1849_s20 = sshll.u32 %s2113_s30, 9  ;;  %s1818_s21 = sshll.u32 %s262_s19, 6 }
  0x10   : > { %s3162_s17 = scalar_select %p2230_p11, 1, 0 }
  0x11   : > { %s3163_s18 = scalar_select %p2234_p12, 1, 0 }
  0x12   : > { %s2243_s24 = scalar_lea.hbm %s3143_s0, %s1849_s20  ;;  %s266_s25 = scalar_lea.vmem [#allocation2], %s1818_s21 }
  0x13   : > { %s273_s26 = sshll.u32 %s266_s25, 4  ;;  %p2247_p13 = pnand %p1887_p10, %p2219_p5  ;;  %s2251_s26 = int_to_ptr.vmem [resolvable:$true] %s273_s26 }
  0x14   : > { %s2254_s12 = scalar_lea.sflag [#allocation3], %s262_s19  ;;  %s2017_s13 = scalar_lea.hbm %s2243_s24, 1024 }
  0x15   : > { %p2018_p1 = scmp.ne.s32.totalorder %s2243_s24, %s2017_s13  ;;  %p2019_p2 = pneg %p2247_p13 }
  0x16   : > { %s2022_s21 = scalar_lea.hbm %s3143_s0, 2048  ;;  %p2023_p5 = scmp.lt.u32.totalorder %s2243_s24, %s3143_s0 }
  0x17   : > { %p2020_p3 = pnand %p2019_p2, %p2018_p1  ;;  %p2024_p7 = scmp.lt.u32.totalorder %s2022_s21, %s2017_s13 }
  0x18   : > { %p2026_p10 = scmp.lt.u32.totalorder %s2017_s13, %s2243_s24 }
  0x19   : > { %p2021_p4 = pneg %p2020_p3  ;;  %p2025_p8 = por %p2024_p7, %p2023_p5 }
  0x1b   : > { %p2027_p9 = por %p2026_p10, %p2025_p8 }
  0x1d   : > { %p2028_p0 = pnand %p2027_p9, %p2021_p4 }
  0x1f   : > { %2031 = shalt.err (!%p2028_p0)
}
  0x20   : > { %s2032_s19 = scalar_lea.vmem %s2251_s26, 1024  ;;  %s2115_s25 = smov [#allocation2]  }
  0x21   : > { %p2033_p1 = scmp.ne.s32.totalorder %s2251_s26, %s2032_s19  ;;  %s2037_s15 = sshll.u32 %s2115_s25, 4  ;;  %s2038_s15 = int_to_ptr.vmem [resolvable:$false] %s2037_s15 }
  0x22   : > { %s2039_s20 = scalar_lea.vmem %s2038_s15, 2048  ;;  %p2040_p11 = scmp.lt.s32.totalorder %s2251_s26, %s2038_s15 }
  0x23   : > { %p2035_p3 = pnand %p2033_p1, %p2019_p2  ;;  %p2041_p5 = scmp.lt.s32.totalorder %s2039_s20, %s2032_s19 }
  0x25   : > { %p2036_p12 = pneg %p2035_p3  ;;  %p2042_p7 = por %p2041_p5, %p2040_p11 }
  0x27   : > { %p2043_p8 = pnand %p2042_p7, %p2036_p12 }
  0x29   : > { %2046 = shalt.err (!%p2043_p8)
}
  0x2a   : > { %s2116_s13 = smov 1024   ;;  %s2117_s21 = smov 512  }
  0x2b   : > { %s2118_s22 = smov 32   ;;  %p281_p9 = scmp.lt.s32.totalorder %s2113_s30, 3 }
  0x2c   : > { %1882 = dma.hbm_to_vmem [thread:$0]  (!%p2247_p13), %s2243_s24, 1024, %s2251_s26, %s2254_s12, %s2116_s13, %s2117_s21, %s2118_s22  }
  0x2d   : > { %p3165_p0 = scmp.ge.s32.totalorder %s2113_s30, 1 }
  0x2f   : > { %p282_p2 = pnand %p3165_p0, %p281_p9 }
  0x31   : > { %285 = sbr.rel (%p282_p2) target bundleno = 2447 (0x98f), region = 52 }
  0x38   : > { %s2286_s23 = sand.u32 1, %s2105_s28  }
  0x39   : > { %s3157_s19 = sshll.u32 %s2286_s23, 6  ;;  %s288_s25 = scalar_lea.sflag [#allocation3], %s2286_s23 }
  0x3a   : > { %s291_s15 = scalar_lea.vmem [#allocation2], %s3157_s19 }
  0x3b   : > { %2092 = dma.done.wait (%p2223_p6), %s288_s25, 1024  }
  0x3c   : > { %2094 = vsyncadd (%p2223_p6), %s288_s25, 4294966272  ;;  %v3153_v0 = vmov 0   ;;  %v328_v1 = vld [vmem:[%s291_s15 + $0x8] sm:$0xff]  ;;  %v330_v3 = vld [vmem:[%s291_s15 + $0x18] sm:$0xff]  ;;  %vm358_vm0 = vcmask 130048   ;;  %vm464_vm1 = vcmask 7168  }
  0x3d   : > { %394 = vmatprep.mubr.bf16.mxu0 %v3153_v0  ;;  %437 = vmatprep.mubr.bf16.mxu1 %v3153_v0  ;;  %v332_v2 = vld [vmem:[%s291_s15 + $0x28] sm:$0xff]  ;;  %v334_v5 = vld [vmem:[%s291_s15 + $0x38] sm:$0xff]  ;;  %v327_v6 = vld [vmem:[%s291_s15] sm:$0xff]  ;;  %vm1131_vm6 = vcmask 261120   ;;  %p3185_p11 = scmp.ne.s32.totalorder %s3162_s17, 0 }
  0x3e   : > { %1939 = vset.pattern.permute.xlu0 %v3153_v0  ;;  %v340_v4 = vpack.c.bf16 %v332_v2, %v328_v1  ;;  %v331_v7 = vld [vmem:[%s291_s15 + $0x20] sm:$0xff]  ;;  %v342_v8 = vpack.c.bf16 %v334_v5, %v330_v3  ;;  %v329_v10 = vld [vmem:[%s291_s15 + $0x10] sm:$0xff]  ;;  %v2311_v15 = vld [vmem:[%s3147_s4 + $0x8] sm:$0xff] }
  0x3f   : > { %v339_v9 = vpack.c.bf16 %v331_v7, %v327_v6  ;;  %v333_v11 = vld [vmem:[%s291_s15 + $0x30] sm:$0xff]  ;;  %v1955_v13 = vld [vmem:[%s3144_s1] sm:$0xff]  }
  0x40   : > { %362 = vmatprep.subr.bf16.mxu0 %v340_v4  ;;  %v341_v12 = vpack.c.bf16 %v333_v11, %v329_v10  ;;  %v2305_v14 = vld [vmem:[%s3147_s4] sm:$0xff]  ;;  %405 = vmatprep.subr.bf16.mxu1 %v342_v8 }
  0x41   : > { %363 = vmatpush1.bf16.msra.mxu0 %v339_v9  ;;  %345 = vperm.xlu0 %1939, %v2305_v14  }
  0x42   : > { %406 = vmatpush1.bf16.msra.mxu1 %v341_v12 }
  0x44   : > { %1825 = vmatmul.mubr.msk.bf16.vlgmr.msra.gmra.mrb[0].mxu0 %vm358_vm0, %v1955_v13 }
  0x45   : > { %1826 = vmatmul.mubr.msk.bf16.vlgmr.msra.gmra.mrb[0].mxu1 %vm358_vm0, %v1955_v13  ;;  %1170 = vmatprep.mubr.bf16.mxu0 %v3153_v0 }
  0x46   : > { %350 = vperm.xlu0 %1939, %v2311_v15   ;;  %1223 = vmatprep.mubr.bf16.mxu1 %v3153_v0 }
  0xc0   : > { %v346_v16 = vpop.permute.xlu0 %345 }
  0xc5   : > { %v351_v18 = vpop.permute.xlu0 %350 }
 0x117   : > { %v396_v17 = vpop.f32.mrb[0].mxu0 }
 0x118   : > { %v2318_v19 = vadd.f32 %v396_v17, %v346_v16  ;;  %v439_v20 = vpop.f32.mrb[0].mxu1  ;;  %v398_v21 = vpop.f32.mrb[1].mxu0 }
 0x119   : > { %v2320_v22 = vadd.f32 %v398_v21, %v346_v16  ;;  %v441_v23 = vpop.f32.mrb[1].mxu1  ;;  %v400_v24 = vpop.f32.mrb[2].mxu0  ;;  %v2338_v37 = vadd.f32 %v439_v20, %v346_v16 }
 0x11a   : > { %v443_v25 = vpop.f32.mrb[2].mxu1  ;;  %v402_v26 = vpop.f32.mrb[3].mxu0  ;;  %v454_v27 = vmul.f32 %v2318_v19, %v2318_v19  ;;  %v2324_v28 = vadd.f32 %v400_v24, %v351_v18  ;;  %v2340_v38 = vadd.f32 %v441_v23, %v346_v16 }
 0x11b   : > { %v2326_v29 = vadd.f32 %v402_v26, %v351_v18  ;;  %v445_v30 = vpop.f32.mrb[3].mxu1  ;;  %v448_v31 = vadd.f32 %v2320_v22, %v2318_v19  ;;  %v455_v32 = vmul.f32 %v2320_v22, %v2320_v22  ;;  %v2342_v40 = vadd.f32 %v443_v25, %v351_v18 }
 0x11c   : > { %v456_v35 = vmul.f32 %v2324_v28, %v2324_v28  ;;  %v2344_v41 = vadd.f32 %v445_v30, %v351_v18  ;;  %v541_v42 = vadd.f32 %v2340_v38, %v2338_v37  ;;  %v547_v44 = vmul.f32 %v2338_v37, %v2338_v37 }
 0x11d   : > { %449 = vadd.xlane.f32.xlu1 %v448_v31  ;;  %v458_v33 = vadd.f32 %v455_v32, %v454_v27  ;;  %v451_v34 = vadd.f32 %v2326_v29, %v2324_v28  ;;  %v457_v36 = vmul.f32 %v2326_v29, %v2326_v29  ;;  %v548_v45 = vmul.f32 %v2340_v38, %v2340_v38 }
 0x11e   : > { %v544_v43 = vadd.f32 %v2344_v41, %v2342_v40  ;;  %v549_v47 = vmul.f32 %v2342_v40, %v2342_v40  ;;  %v550_v48 = vmul.f32 %v2344_v41, %v2344_v41  ;;  %v2120_v25 = vmov 1  }
 0x11f   : > { %459 = vadd.xlane.f32.xlu0 %v458_v33  ;;  %v461_v39 = vadd.f32 %v457_v36, %v456_v35  ;;  %v551_v46 = vadd.f32 %v548_v45, %v547_v44  ;;  %1941 = vset.pattern.permute.xlu1 %v2120_v25 }
 0x120   : > { %v554_v49 = vadd.f32 %v550_v48, %v549_v47  ;;  %1940 = vset.pattern.permute.xlu0 %v2120_v25 }
 0x121   : > { %452 = vadd.xlane.f32.xlu1 %v451_v34 }
 0x125   : > { %462 = vadd.xlane.f32.xlu1 %v461_v39 }
 0x129   : > { %542 = vadd.xlane.f32.xlu1 %v541_v42 }
 0x12d   : > { %545 = vadd.xlane.f32.xlu1 %v544_v43 }
 0x131   : > { %552 = vadd.xlane.f32.xlu1 %v551_v46 }
 0x135   : > { %555 = vadd.xlane.f32.xlu1 %v554_v49 }
 0x1aa   : > { %v450_v50 = vpop.xlane.xlu1 %449 }
 0x1ab   : > { %v465_v52 = vsel %vm464_vm1, %v450_v50, 0.0 }
 0x1ac   : > { %v460_v54 = vpop.xlane.xlu0 %459 }
 0x1ad   : > { %v478_v57 = vsel %vm464_vm1, %v460_v54, 0.0 }
 0x1ae   : > { %v453_v51 = vpop.xlane.xlu1 %452 }
 0x1af   : > { %v466_v53 = vsel %vm464_vm1, %v453_v51, 0.0 }
 0x1b0   : > { %v467_v55 = vadd.f32 %v466_v53, %v465_v52 }
 0x1b2   : > { %468 = vadd.xlane.f32.xlu1 %v467_v55  ;;  %v463_v56 = vpop.xlane.xlu1 %462 }
 0x1b3   : > { %v479_v58 = vsel %vm464_vm1, %v463_v56, 0.0 }
 0x1b4   : > { %v480_v59 = vadd.f32 %v479_v58, %v478_v57 }
 0x1b6   : > { %481 = vadd.xlane.f32.xlu1 %v480_v59  ;;  %v543_v60 = vpop.xlane.xlu1 %542 }
 0x1b7   : > { %v557_v62 = vsel %vm464_vm1, %v543_v60, 0.0 }
 0x1ba   : > { %v546_v61 = vpop.xlane.xlu1 %545 }
 0x1bb   : > { %v558_v63 = vsel %vm464_vm1, %v546_v61, 0.0 }
 0x1bc   : > { %v559_v1 = vadd.f32 %v558_v63, %v557_v62  ;;  %v2122_v62 = vmov 2  }
 0x1be   : > { %560 = vadd.xlane.f32.xlu1 %v559_v1  ;;  %v553_v2 = vpop.xlane.xlu1 %552 }
 0x1bf   : > { %v570_v4 = vsel %vm464_vm1, %v553_v2, 0.0 }
 0x1c2   : > { %v556_v3 = vpop.xlane.xlu1 %555 }
 0x1c3   : > { %v571_v5 = vsel %vm464_vm1, %v556_v3, 0.0 }
 0x1c4   : > { %v572_v6 = vadd.f32 %v571_v5, %v570_v4  ;;  %v757_v4 = vld [vmem:[%s3148_s5] sm:$0xff]  ;;  %v1828_v5 = vld [vmem:[%s3148_s5 + $0x18] sm:$0xff] }
 0x1c6   : > { %573 = vadd.xlane.f32.xlu0 %v572_v6  ;;  %v1832_v6 = vld [vmem:[%s3148_s5 + $0x28] sm:$0xff] }
 0x23f   : > { %v469_v7 = vpop.xlane.xlu1 %468 }
 0x240   : > { %v470_v8 = vrot.slane %v469_v7, 4 }
 0x242   : > { %v471_v9 = vadd.f32 %v470_v8, %v469_v7 }
 0x243   : > { %v482_v10 = vpop.xlane.xlu1 %481 }
 0x244   : > { %v472_v11 = vrot.slane %v471_v9, 2  ;;  %v483_v12 = vrot.slane %v482_v10, 4 }
 0x246   : > { %v484_v13 = vadd.f32 %v483_v12, %v482_v10  ;;  %v473_v16 = vadd.f32 %v472_v11, %v471_v9  ;;  %v758_v11 = vld [vmem:[%s3148_s5 + $0x8] sm:$0xff]  ;;  %v1827_v12 = vld [vmem:[%s3148_s5 + $0x10] sm:$0xff] }
 0x248   : > { %v485_v17 = vrot.slane %v484_v13, 2  ;;  %v474_v18 = vrot.slane %v473_v16, 1 }
 0x24a   : > { %v475_v20 = vadd.f32 %v474_v18, %v473_v16  ;;  %v486_v21 = vadd.f32 %v485_v17, %v484_v13  ;;  %v1831_v13 = vld [vmem:[%s3148_s5 + $0x20] sm:$0xff] }
 0x24b   : > { %v561_v26 = vpop.xlane.xlu1 %560 }
 0x24c   : > { %1851 = vpush %v475_v20  ;;  %v487_v23 = vrot.slane %v486_v21, 1  ;;  %v562_v30 = vrot.slane %v561_v26, 4 }
 0x24e   : > { %v488_v24 = vadd.f32 %v487_v23, %v486_v21  ;;  %v563_v32 = vadd.f32 %v562_v30, %v561_v26 }
 0x250   : > { %1853 = vpush %v488_v24  ;;  %v564_v34 = vrot.slane %v563_v32, 2 }
 0x252   : > { %v565_v39 = vadd.f32 %v564_v34, %v563_v32 }
 0x253   : > { %v574_v27 = vpop.xlane.xlu0 %573 }
 0x254   : > { %v575_v31 = vrot.slane %v574_v27, 4  ;;  %v566_v43 = vrot.slane %v565_v39, 1 }
 0x256   : > { %v576_v33 = vadd.f32 %v575_v31, %v574_v27  ;;  %v567_v46 = vadd.f32 %v566_v43, %v565_v39 }
 0x258   : > { %v577_v35 = vrot.slane %v576_v33, 2 }
 0x25a   : > { %v578_v42 = vadd.f32 %v577_v35, %v576_v33 }
 0x25c   : > { %v579_v44 = vrot.slane %v578_v42, 1 }
 0x25e   : > { %v580_v47 = vadd.f32 %v579_v44, %v578_v42 }
 0x27d   : > { %s1852_s13 = spop %1851 }
 0x27e   : > { %s2366_s21 = smul.f32 0.00024414063, %s1852_s13 }
 0x280   : > { %s491_s22 = smul.f32 %s2366_s21, %s2366_s21  ;;  %v500_v51 = vstv %s2366_s21 }
 0x281   : > { %s1854_s25 = spop %1853 }
 0x282   : > { %s490_s15 = smul.f32 0.00024414063, %s1854_s25 }
 0x284   : > { %s492_s16 = ssub.f32 %s490_s15, %s491_s22  ;;  %s3158_s15 = smov 1  }
 0x286   : > { %s493_s24 = sadd.f32 1e-05, %s492_s16 }
 0x288   : > { %v494_v36 = vstv %s493_s24 }
 0x289   : > { %1959 = vrsqrt.f32 %v494_v36 }
 0x293   : > { %v1960_v45 = vpop.eup %1959 }
 0x294   : > { %1855 = vpush %v1960_v45 }
 0x295   : > { %1857 = vpush %v567_v46 }
 0x296   : > { %1859 = vpush %v580_v47 }
 0x2c5   : > { %s1856_s26 = spop %1855 }
 0x2c6   : > { %v497_v48 = vstv %s1856_s26  ;;  %s1858_s10 = spop %1857 }
 0x2c7   : > { %v498_v49 = vmul.f32 %v497_v48, %v2305_v14  ;;  %v499_v50 = vmul.f32 %v497_v48, %v2311_v15  ;;  %s569_s12 = smul.f32 0.00024414063, %s1858_s10  ;;  %s1860_s20 = spop %1859 }
 0x2c8   : > { %s582_s13 = smul.f32 0.00024414063, %s1860_s20  ;;  %s2123_s10 = smov 127  }
 0x2c9   : > { %v501_v52 = vmul.f32 %v500_v51, %v498_v49  ;;  %v502_v53 = vmul.f32 %v500_v51, %v499_v50  ;;  %s583_s22 = smul.f32 %s569_s12, %s569_s12  ;;  %v592_v59 = vstv %s569_s12  ;;  %s2124_s12 = smov 112  }
 0x2ca   : > { %s2125_s20 = smov 16  }
 0x2cb   : > { %s584_s25 = ssub.f32 %s582_s13, %s583_s22  ;;  %507 = vrot.lane.b32.xlu0 %v502_v53, %s3158_s15  ;;  %505 = vrot.lane.b32.xlu1 %v501_v52, %s3158_s15 }
 0x2cd   : > { %s585_s16 = sadd.f32 1e-05, %s584_s25 }
 0x2cf   : > { %v586_v54 = vstv %s585_s16  ;;  %515 = vperm.xlu0 %1940, %v498_v49  }
 0x2d0   : > { %1961 = vrsqrt.f32 %v586_v54 }
 0x2da   : > { %v1962_v55 = vpop.eup %1961 }
 0x2db   : > { %1861 = vpush %v1962_v55 }
 0x30c   : > { %s1862_s24 = spop %1861 }
 0x30d   : > { %v589_v56 = vstv %s1862_s24 }
 0x30e   : > { %v590_v57 = vmul.f32 %v589_v56, %v2305_v14  ;;  %v591_v58 = vmul.f32 %v589_v56, %v2311_v15 }
 0x310   : > { %v593_v60 = vmul.f32 %v592_v59, %v590_v57  ;;  %612 = vperm.xlu0 %1940, %v591_v58   ;;  %v594_v61 = vmul.f32 %v592_v59, %v591_v58 }
 0x312   : > { %597 = vrot.lane.b32.xlu1 %v593_v60, %s3158_s15 }
 0x314   : > { %1943 = vset.pattern.permute.xlu0 %v2122_v62 }
 0x316   : > { %599 = vrot.lane.b32.xlu1 %v594_v61, %s3158_s15 }
 0x31a   : > { %520 = vperm.xlu1 %1941, %v499_v50  }
 0x31e   : > { %607 = vperm.xlu1 %1941, %v590_v57  }
 0x322   : > { %1942 = vset.pattern.permute.xlu1 %v2122_v62 }
 0x33d   : > { %v508_v63 = vpop.permute.xlu0 %507  ;;  %v506_v1 = vpop.permute.xlu1 %505 }
 0x33e   : > { %v512_v2 = vsub.f32 %v2311_v15, %v508_v63  ;;  %v511_v3 = vsub.f32 %v2305_v14, %v506_v1 }
 0x340   : > { %534 = vperm.xlu0 %1943, %v512_v2   ;;  %529 = vperm.xlu1 %1942, %v511_v3  }
 0x344   : > { %1944 = vset.pattern.permute.xlu0 %v3153_v0 }
 0x345   : > { %791 = vperm.xlu0 %1944, %v757_v4  }
 0x349   : > { %886 = vperm.xlu0 %1944, %v1828_v5  }
 0x34d   : > { %1043 = vperm.xlu0 %1944, %v1832_v6  }
 0x34e   : > { %v516_v17 = vpop.permute.xlu0 %515 }
 0x34f   : > { %v523_v21 = vmul.f32 %v516_v17, %v2318_v19  ;;  %v524_v23 = vmul.f32 %v516_v17, %v2320_v22 }
 0x384   : > { %v598_v7 = vpop.permute.xlu1 %597 }
 0x385   : > { %v603_v8 = vsub.f32 %v2305_v14, %v598_v7 }
 0x387   : > { %621 = vperm.xlu1 %1942, %v603_v8  }
 0x388   : > { %v600_v9 = vpop.permute.xlu1 %599 }
 0x389   : > { %v604_v10 = vsub.f32 %v2311_v15, %v600_v9 }
 0x38b   : > { %626 = vperm.xlu1 %1942, %v604_v10  }
 0x38f   : > { %1945 = vset.pattern.permute.xlu1 %v3153_v0  ;;  %v2403_v18 = vpop.permute.xlu0 %612 }
 0x390   : > { %796 = vperm.xlu1 %1945, %v758_v11  }
 0x394   : > { %881 = vperm.xlu1 %1945, %v1827_v12   ;;  %v617_v12 = vmul.f32 %v2403_v18, %v2342_v40 }
 0x398   : > { %1038 = vperm.xlu1 %1945, %v1831_v13   ;;  %v618_v13 = vmul.f32 %v2403_v18, %v2344_v41 }
 0x399   : > { %v521_v16 = vpop.permute.xlu1 %520 }
 0x39a   : > { %v525_v24 = vmul.f32 %v521_v16, %v2324_v28  ;;  %v526_v25 = vmul.f32 %v521_v16, %v2326_v29 }
 0x39d   : > { %v2405_v20 = vpop.permute.xlu1 %607 }
 0x39e   : > { %v615_v7 = vmul.f32 %v2405_v20, %v2338_v37  ;;  %v616_v8 = vmul.f32 %v2405_v20, %v2340_v38 }
 0x3bf   : > { %v535_v26 = vpop.permute.xlu0 %534  ;;  %v530_v27 = vpop.permute.xlu1 %529 }
 0x3c0   : > { %v539_v30 = vadd.f32 %v535_v26, %v525_v24  ;;  %v540_v31 = vadd.f32 %v535_v26, %v526_v25  ;;  %v537_v32 = vadd.f32 %v530_v27, %v523_v21  ;;  %v538_v33 = vadd.f32 %v530_v27, %v524_v23 }
 0x3c2   : > { %v645_v34 = vmul.f32 0.044715, %v539_v30  ;;  %v646_v35 = vmul.f32 0.044715, %v540_v31  ;;  %v641_v36 = vmul.f32 0.044715, %v537_v32 }
 0x3c3   : > { %v642_v39 = vmul.f32 0.044715, %v538_v33  ;;  %v638_v57 = vmul.f32 0.5, %v540_v31  ;;  %v634_v62 = vmul.f32 0.5, %v538_v33  ;;  %v637_v1 = vmul.f32 0.5, %v539_v30 }
 0x3c4   : > { %v653_v42 = vmul.f32 %v645_v34, %v539_v30  ;;  %v654_v43 = vmul.f32 %v646_v35, %v540_v31  ;;  %v649_v44 = vmul.f32 %v641_v36, %v537_v32  ;;  %v633_v5 = vmul.f32 0.5, %v537_v32 }
 0x3c5   : > { %v650_v19 = vmul.f32 %v642_v39, %v538_v33  ;;  %v721_v39 = vlaneseq }
 0x3c6   : > { %v661_v45 = vmul.f32 %v653_v42, %v539_v30  ;;  %v662_v22 = vmul.f32 %v654_v43, %v540_v31  ;;  %v657_v46 = vmul.f32 %v649_v44, %v537_v32 }
 0x3c7   : > { %v658_v28 = vmul.f32 %v650_v19, %v538_v33  ;;  %v2460_v44 = vshrl.u32 %v721_v39, 7 }
 0x3c8   : > { %v669_v47 = vadd.f32 %v661_v45, %v539_v30  ;;  %v670_v29 = vadd.f32 %v662_v22, %v540_v31  ;;  %v665_v48 = vadd.f32 %v657_v46, %v537_v32 }
 0x3c9   : > { %v666_v49 = vadd.f32 %v658_v28, %v538_v33  ;;  %v2463_v19 = vsub.s32 2, %v2460_v44  ;;  %v2466_v45 = vsub.s32 3, %v2460_v44  ;;  %v2473_v28 = vld [vmem:[%s3149_s6 + $0x4] sm:$0xf] }
 0x3ca   : > { %v677_v50 = vmul.f32 0.7978846, %v669_v47  ;;  %v678_v51 = vmul.f32 0.7978846, %v670_v29  ;;  %v673_v52 = vmul.f32 0.7978846, %v665_v48 }
 0x3cb   : > { %v674_v53 = vmul.f32 0.7978846, %v666_v49  ;;  %v2478_v47 = vld [vmem:[%s3150_s7 + $0x4] sm:$0xf] }
 0x3cc   : > { %1963 = vtanh.f32 %v677_v50  ;;  %v2482_v50 = vrot.slane %v2473_v28, %v2463_v19 }
 0x3cd   : > { %1965 = vtanh.f32 %v678_v51  ;;  %v2486_v51 = vrot.slane %v2478_v47, %v2463_v19 }
 0x3ce   : > { %1967 = vtanh.f32 %v673_v52 }
 0x3cf   : > { %1969 = vtanh.f32 %v674_v53 }
 0x3d6   : > { %v1964_v54 = vpop.eup %1963 }
 0x3d7   : > { %v1966_v55 = vpop.eup %1965  ;;  %v693_v60 = vadd.f32 1.0, %v1964_v54  ;;  %v2490_v54 = vrot.slane %v2473_v28, %v2466_v45 }
 0x3d8   : > { %v1968_v56 = vpop.eup %1967  ;;  %v694_v58 = vadd.f32 1.0, %v1966_v55  ;;  %v2494_v55 = vrot.slane %v2478_v47, %v2466_v45 }
 0x3d9   : > { %v1970_v59 = vpop.eup %1969  ;;  %v689_v2 = vadd.f32 1.0, %v1968_v56  ;;  %v2417_v4 = vmul.f32 %v693_v60, %v637_v1 }
 0x3da   : > { %v2411_v61 = vmul.f32 %v694_v58, %v638_v57  ;;  %v690_v63 = vadd.f32 1.0, %v1970_v59 }
 0x3db   : > { %v2421_v6 = vmul.f32 %v689_v2, %v633_v5 }
 0x3dc   : > { %v2413_v3 = vmul.f32 %v690_v63, %v634_v62  ;;  %711 = vrot.lane.b32.xlu0 %v2411_v61, %s2123_s10 }
 0x3de   : > { %709 = vrot.lane.b32.xlu1 %v2413_v3, %s2123_s10 }
 0x3e0   : > { %707 = vrot.lane.b32.xlu0 %v2417_v4, %s2123_s10 }
 0x3e2   : > { %705 = vrot.lane.b32.xlu1 %v2421_v6, %s2123_s10 }
 0x3e4   : > { %954 = vrot.lane.b32.xlu0 %v2417_v4, %s3158_s15 }
 0x3e6   : > { %952 = vrot.lane.b32.xlu1 %v2421_v6, %s3158_s15 }
 0x3e8   : > { %958 = vrot.lane.b32.xlu0 %v2411_v61, %s3158_s15 }
 0x3ea   : > { %956 = vrot.lane.b32.xlu1 %v2413_v3, %s3158_s15 }
 0x3ec   : > { %738 = vrot.lane.b32.xlu0 %v2411_v61, %s2124_s12 }
 0x3ee   : > { %736 = vrot.lane.b32.xlu1 %v2413_v3, %s2124_s12 }
 0x3f0   : > { %734 = vrot.lane.b32.xlu0 %v2417_v4, %s2124_s12 }
 0x3f2   : > { %732 = vrot.lane.b32.xlu1 %v2421_v6, %s2124_s12 }
 0x3f4   : > { %979 = vrot.lane.b32.xlu0 %v2417_v4, %s2125_s20 }
 0x3f6   : > { %977 = vrot.lane.b32.xlu1 %v2421_v6, %s2125_s20 }
 0x3f8   : > { %983 = vrot.lane.b32.xlu0 %v2411_v61, %s2125_s20 }
 0x3fa   : > { %981 = vrot.lane.b32.xlu1 %v2413_v3, %s2125_s20 }
 0x406   : > { %v622_v9 = vpop.permute.xlu1 %621 }
 0x407   : > { %v629_v10 = vadd.f32 %v622_v9, %v615_v7  ;;  %v630_v11 = vadd.f32 %v622_v9, %v616_v8 }
 0x409   : > { %v643_v16 = vmul.f32 0.044715, %v629_v10  ;;  %v644_v17 = vmul.f32 0.044715, %v630_v11  ;;  %v635_v48 = vmul.f32 0.5, %v629_v10  ;;  %v636_v52 = vmul.f32 0.5, %v630_v11 }
 0x40a   : > { %v627_v21 = vpop.permute.xlu1 %626 }
 0x40b   : > { %v651_v23 = vmul.f32 %v643_v16, %v629_v10  ;;  %v652_v24 = vmul.f32 %v644_v17, %v630_v11  ;;  %v631_v25 = vadd.f32 %v627_v21, %v617_v12  ;;  %v632_v26 = vadd.f32 %v627_v21, %v618_v13 }
 0x40c   : > { %v2126_v21 = vmov 3  }
 0x40d   : > { %v659_v37 = vmul.f32 %v651_v23, %v629_v10  ;;  %v660_v27 = vmul.f32 %v652_v24, %v630_v11  ;;  %v647_v30 = vmul.f32 0.044715, %v631_v25  ;;  %v648_v38 = vmul.f32 0.044715, %v632_v26  ;;  %1946 = vset.pattern.permute.xlu1 %v2126_v21  ;;  %1947 = vset.pattern.permute.xlu0 %v2126_v21  ;;  %v2546_v24 = vpop.permute.xlu0 %791 }
 0x40e   : > { %v639_v63 = vmul.f32 0.5, %v631_v25  ;;  %v640_v16 = vmul.f32 0.5, %v632_v26  ;;  %v2127_v23 = vmov 4  }
 0x40f   : > { %v667_v20 = vadd.f32 %v659_v37, %v629_v10  ;;  %v668_v31 = vadd.f32 %v660_v27, %v630_v11  ;;  %v655_v32 = vmul.f32 %v647_v30, %v631_v25  ;;  %v656_v33 = vmul.f32 %v648_v38, %v632_v26  ;;  %v2468_v46 = vpop.permute.xlu1 %796 }
 0x411   : > { %v675_v34 = vmul.f32 0.7978846, %v667_v20  ;;  %v676_v40 = vmul.f32 0.7978846, %v668_v31  ;;  %v663_v35 = vmul.f32 %v655_v32, %v631_v25  ;;  %v664_v36 = vmul.f32 %v656_v33, %v632_v26 }
 0x413   : > { %1971 = vtanh.f32 %v675_v34  ;;  %v671_v41 = vadd.f32 %v663_v35, %v631_v25  ;;  %v672_v18 = vadd.f32 %v664_v36, %v632_v26  ;;  %v2499_v2 = vpop.permute.xlu1 %881  ;;  %v2550_v26 = vpop.permute.xlu0 %886  ;;  %v767_v36 = vsub.s32 1, %v2460_v44 }
 0x414   : > { %1973 = vtanh.f32 %v676_v40  ;;  %3169 = vst [vmem:[#allocation11_spill] sm:$0xff] %v2550_v26  ;;  %v763_v40 = vsub.s32 0, %v2460_v44 }
 0x415   : > { %v679_v42 = vmul.f32 0.7978846, %v671_v41  ;;  %v680_v43 = vmul.f32 0.7978846, %v672_v18 }
 0x416   : > { %v854_v41 = vrot.slane %v2473_v28, %v763_v40  ;;  %v903_v18 = vrot.slane %v2478_v47, %v763_v40 }
 0x417   : > { %1975 = vtanh.f32 %v679_v42  ;;  %v2548_v25 = vpop.permute.xlu1 %1038  ;;  %v2552_v37 = vpop.permute.xlu0 %1043 }
 0x418   : > { %1977 = vtanh.f32 %v680_v43  ;;  %v858_v43 = vrot.slane %v2473_v28, %v767_v36  ;;  %v875_v44 = vmul.f32 %v854_v41, %v2417_v4 }
 0x41a   : > { %v876_v28 = vmul.f32 %v858_v43, %v2411_v61 }
 0x41d   : > { %v1972_v22 = vpop.eup %1971 }
 0x41e   : > { %v1974_v29 = vpop.eup %1973  ;;  %v691_v49 = vadd.f32 1.0, %v1972_v22  ;;  %v2582_v22 = vand.u32 127, %v721_v39 }
 0x41f   : > { %v692_v53 = vadd.f32 1.0, %v1974_v29 }
 0x420   : > { %v699_v56 = vmul.f32 %v691_v49, %v635_v48  ;;  %v907_v48 = vrot.slane %v2478_v47, %v767_v36  ;;  %v759_v49 = vld [vmem:[%s3149_s6] sm:$0xf]  ;;  %vm723_vm2 = vcmp.lt.s32.totalorder %v2582_v22, 127  ;;  %vm968_vm3 = vcmp.lt.s32.totalorder %v2582_v22, 1 }
 0x421   : > { %v700_v57 = vmul.f32 %v692_v53, %v636_v52  ;;  %v1976_v58 = vpop.eup %1975  ;;  %v924_v52 = vmul.f32 %v903_v18, %v2417_v4  ;;  %v1833_v53 = vld [vmem:[%s3149_s6 + $0x8] sm:$0xf]  ;;  %vm748_vm4 = vcmp.lt.s32.totalorder %v2582_v22, 112  ;;  %vm993_vm5 = vcmp.lt.s32.totalorder %v2582_v22, 16 }
 0x422   : > { %713 = vrot.lane.b32.xlu1 %v699_v56, %s2123_s10  ;;  %v873_v59 = vmul.f32 %v2482_v50, %v699_v56  ;;  %v922_v60 = vmul.f32 %v2486_v51, %v699_v56  ;;  %v1978_v62 = vpop.eup %1977  ;;  %v695_v1 = vadd.f32 1.0, %v1976_v58  ;;  %v925_v39 = vmul.f32 %v907_v48, %v2411_v61  ;;  %v2612_v61 = vld [vmem:[%s3150_s7 + $0x8] sm:$0xf] }
 0x423   : > { %v874_v5 = vmul.f32 %v2490_v54, %v700_v57  ;;  %v923_v7 = vmul.f32 %v2494_v55, %v700_v57  ;;  %v696_v10 = vadd.f32 1.0, %v1978_v62  ;;  %v871_v58 = vmul.f32 %v854_v41, %v2421_v6 }
 0x424   : > { %v2504_v8 = vmul.f32 %v2499_v2, %v873_v59  ;;  %v2507_v9 = vmul.f32 %v922_v60, %v2499_v2  ;;  %v2509_v11 = vmul.f32 %v695_v1, %v639_v63  ;;  %v1015_v4 = vrot.slane %v1833_v53, %v767_v36  ;;  %v807_v59 = vld [vmem:[%s3150_s7] sm:$0xf] }
 0x425   : > { %v2512_v12 = vmul.f32 %v2499_v2, %v874_v5  ;;  %v2515_v13 = vmul.f32 %v923_v7, %v2499_v2  ;;  %v2520_v17 = vmul.f32 %v696_v10, %v640_v16  ;;  %v2607_v60 = vmul.f32 %v924_v52, %v2550_v26 }
 0x426   : > { %3166 = vst [vmem:[#allocation8_spill] sm:$0xff] %v2507_v9  ;;  %964 = vrot.lane.b32.xlu1 %v700_v57, %s3158_s15  ;;  %715 = vrot.lane.b32.xlu0 %v2509_v11, %s2123_s10  ;;  %v920_v1 = vmul.f32 %v903_v18, %v2421_v6  ;;  %v872_v5 = vmul.f32 %v858_v43, %v2413_v3 }
 0x427   : > { %3167 = vst [vmem:[#allocation9_spill] sm:$0xff] %v2512_v12  ;;  %3168 = vst [vmem:[#allocation10_spill] sm:$0xff] %v2515_v13  ;;  %v894_v7 = vmul.f32 %v2550_v26, %v876_v28  ;;  %v768_v10 = vrot.slane %v759_v49, %v767_v36  ;;  %v921_v16 = vmul.f32 %v907_v48, %v2413_v3 }
 0x428   : > { %v2626_v21 = vmul.f32 %v925_v39, %v2550_v26  ;;  %v812_v41 = vrot.slane %v807_v59, %v763_v40  ;;  %v2633_v6 = vrot.slane %v2612_v61, %v767_v36  ;;  %v890_v43 = vmul.f32 %v2499_v2, %v872_v5 }
 0x429   : > { %v2640_v3 = vmul.f32 %v921_v16, %v2499_v2  ;;  %v877_v48 = vmul.f32 %v2482_v50, %v2509_v11  ;;  %v1011_v5 = vrot.slane %v1833_v53, %v763_v40  ;;  %v816_v16 = vrot.slane %v807_v59, %v767_v36 }
 0x42a   : > { %740 = vrot.lane.b32.xlu1 %v699_v56, %s2124_s12  ;;  %966 = vrot.lane.b32.xlu0 %v2520_v17, %s3158_s15  ;;  %v2657_v50 = vrot.slane %v2612_v61, %v763_v40  ;;  %v2681_v13 = vmul.f32 %v2494_v55, %v2520_v17 }
 0x42c   : > { %3171 = vst [vmem:[#allocation13_spill] sm:$0xff] %v2681_v13 }
 0x42e   : > { %989 = vrot.lane.b32.xlu1 %v700_v57, %s2125_s20  ;;  %742 = vrot.lane.b32.xlu0 %v2509_v11, %s2124_s12 }
 0x432   : > { %717 = vrot.lane.b32.xlu1 %v700_v57, %s2123_s10  ;;  %991 = vrot.lane.b32.xlu0 %v2520_v17, %s2125_s20 }
 0x436   : > { %960 = vrot.lane.b32.xlu1 %v699_v56, %s3158_s15  ;;  %719 = vrot.lane.b32.xlu0 %v2520_v17, %s2123_s10 }
 0x43a   : > { %744 = vrot.lane.b32.xlu1 %v700_v57, %s2124_s12  ;;  %962 = vrot.lane.b32.xlu0 %v2509_v11, %s3158_s15  ;;  %v893_v57 = vmul.f32 %v2550_v26, %v875_v44  ;;  %v2630_v44 = vmul.f32 %v920_v1, %v2499_v2 }
 0x43e   : > { %985 = vrot.lane.b32.xlu1 %v699_v56, %s2125_s20  ;;  %746 = vrot.lane.b32.xlu0 %v2520_v17, %s2124_s12  ;;  %v764_v56 = vrot.slane %v759_v49, %v763_v40 }
 0x442   : > { %987 = vrot.lane.b32.xlu0 %v2509_v11, %s2125_s20  ;;  %1245 = vperm.xlu1 %1946, %v2305_v14  }
 0x446   : > { %1249 = vperm.xlu0 %1947, %v2311_v15   ;;  %1948 = vset.pattern.permute.xlu1 %v2127_v23  ;;  %v889_v23 = vmul.f32 %v2499_v2, %v871_v58  ;;  %v926_v2 = vmul.f32 %v2486_v51, %v2509_v11  ;;  %v2671_v51 = vrot.slane %v759_v49, %v2466_v45 }
 0x447   : > { %1333 = vperm.xlu1 %1948, %v2305_v14  }
 0x44b   : > { %1337 = vperm.xlu1 %1948, %v2311_v15  }
 0x44e   : > { %v2554_v30 = vpop.permute.xlu0 %711 }
 0x450   : > { %v710_v27 = vpop.permute.xlu1 %709 }
 0x452   : > { %v2558_v20 = vpop.permute.xlu0 %707 }
 0x453   : > { %v729_v63 = vsel %vm723_vm2, %v2558_v20, %v2554_v30 }
 0x454   : > { %v2556_v38 = vpop.permute.xlu1 %705  ;;  %v785_v18 = vmul.f32 %v764_v56, %v729_v63  ;;  %v878_v63 = vmul.f32 %v2490_v54, %v2520_v17  ;;  %v2668_v54 = vrot.slane %v759_v49, %v2463_v19  ;;  %v2701_v17 = vrot.slane %v1833_v53, %v2463_v19 }
 0x455   : > { %v728_v28 = vsel %vm723_vm2, %v2556_v38, %v710_v27 }
 0x456   : > { %v2562_v14 = vpop.permute.xlu0 %954  ;;  %v803_v11 = vmul.f32 %v2468_v46, %v785_v18  ;;  %v781_v40 = vmul.f32 %v764_v56, %v728_v28  ;;  %v2691_v56 = vmul.f32 %v2550_v26, %v878_v63  ;;  %v2694_v18 = vmul.f32 %v926_v2, %v2550_v26 }
 0x457   : > { %v2707_v63 = vrot.slane %v807_v59, %v2463_v19 }
 0x458   : > { %v2560_v31 = vpop.permute.xlu1 %952  ;;  %3172 = vst [vmem:[#allocation14_spill] sm:$0xff] %v2691_v56  ;;  %3173 = vst [vmem:[#allocation15_spill] sm:$0xff] %v2694_v18  ;;  %v940_v2 = vadd.f32 %v893_v57, %v803_v11 }
 0x45a   : > { %v2566_v32 = vpop.permute.xlu0 %958 }
 0x45b   : > { %v974_v0 = vsel %vm968_vm3, %v2562_v14, %v2566_v32 }
 0x45c   : > { %v2564_v15 = vpop.permute.xlu1 %956 }
 0x45e   : > { %v2570_v34 = vpop.permute.xlu0 %738 }
 0x460   : > { %v2568_v33 = vpop.permute.xlu1 %736 }
 0x462   : > { %v2578_v42 = vpop.permute.xlu0 %734 }
 0x463   : > { %3170 = vst [vmem:[#allocation12_spill] sm:$0xff] %v2578_v42 }
 0x464   : > { %v2573_v35 = vpop.permute.xlu1 %732 }
 0x466   : > { %v2599_v47 = vpop.permute.xlu0 %979 }
 0x468   : > { %v2584_v29 = vpop.permute.xlu1 %977 }
 0x46a   : > { %v2647_v39 = vpop.permute.xlu0 %983 }
 0x46c   : > { %v2614_v62 = vpop.permute.xlu1 %981 }
 0x494   : > { %v2637_v52 = vpop.permute.xlu1 %713 }
 0x495   : > { %v726_v58 = vsel %vm723_vm2, %v710_v27, %v2637_v52  ;;  %v973_v27 = vsel %vm968_vm3, %v2560_v31, %v2564_v15 }
 0x496   : > { %v782_v1 = vmul.f32 %v768_v10, %v726_v58  ;;  %v2677_v58 = vmul.f32 %v2550_v26, %v877_v48  ;;  %v1033_v48 = vmul.f32 %v1015_v4, %v974_v0  ;;  %v1029_v28 = vmul.f32 %v1015_v4, %v973_v27 }
 0x497   : > { %v799_v0 = vmul.f32 %v2546_v24, %v781_v40  ;;  %v754_v4 = vsel %vm748_vm4, %v2578_v42, %v2570_v34  ;;  %v2717_v27 = vrot.slane %v807_v59, %v2466_v45 }
 0x498   : > { %v2674_v36 = vpop.permute.xlu1 %964  ;;  %v800_v9 = vmul.f32 %v2546_v24, %v782_v1  ;;  %v2684_v12 = vpop.permute.xlu0 %715  ;;  %v1047_v59 = vmul.f32 %v2548_v25, %v1029_v28  ;;  %v833_v42 = vmul.f32 %v812_v41, %v754_v4  ;;  %v998_v28 = vsel %vm993_vm5, %v2584_v29, %v2614_v62 }
 0x499   : > { %v975_v49 = vsel %vm968_vm3, %v2674_v36, %v2560_v31  ;;  %v727_v55 = vsel %vm723_vm2, %v2554_v30, %v2684_v12  ;;  %v2704_v31 = vrot.slane %v1833_v53, %v2466_v45  ;;  %v753_v53 = vsel %vm748_vm4, %v2573_v35, %v2568_v33 }
 0x49a   : > { %v786_v1 = vmul.f32 %v768_v10, %v727_v55  ;;  %v1028_v13 = vmul.f32 %v1011_v5, %v975_v49  ;;  %v937_v10 = vadd.f32 %v890_v43, %v800_v9  ;;  %v1051_v49 = vmul.f32 %v2552_v37, %v1033_v48 }
 0x49b   : > { %v999_v9 = vsel %vm993_vm5, %v2599_v47, %v2647_v39  ;;  %v829_v48 = vmul.f32 %v812_v41, %v753_v53 }
 0x49c   : > { %v2714_v30 = vpop.permute.xlu1 %740  ;;  %v804_v57 = vmul.f32 %v2468_v46, %v786_v1  ;;  %v2724_v11 = vpop.permute.xlu0 %966  ;;  %v1046_v1 = vmul.f32 %v2548_v25, %v1028_v13  ;;  %v1082_v41 = vmul.f32 %v2633_v6, %v999_v9 }
 0x49d   : > { %v751_v40 = vsel %vm748_vm4, %v2568_v33, %v2714_v30  ;;  %v976_v55 = vsel %vm968_vm3, %v2724_v11, %v2562_v14  ;;  %v936_v33 = vadd.f32 %v889_v23, %v799_v0 }
 0x49e   : > { %v830_v18 = vmul.f32 %v816_v16, %v751_v40  ;;  %v941_v43 = vadd.f32 %v894_v7, %v804_v57  ;;  %v1032_v26 = vmul.f32 %v1011_v5, %v976_v55  ;;  %v1094_v7 = vadd.f32 %v1047_v59, %v937_v10 }
 0x49f   : > { %v1093_v4 = vadd.f32 %v1046_v1, %v936_v33  ;;  %v837_v10 = vmul.f32 %v829_v48, %v2546_v24  ;;  %v2785_v1 = vrot.slane %v2612_v61, %v2466_v45 }
 0x4a0   : > { %v2745_v56 = vpop.permute.xlu1 %989  ;;  %v1050_v14 = vmul.f32 %v2552_v37, %v1032_v26  ;;  %v2748_v40 = vpop.permute.xlu0 %742  ;;  %v1098_v23 = vadd.f32 %v1051_v49, %v941_v43  ;;  %v838_v5 = vmul.f32 %v830_v18, %v2546_v24  ;;  %v2762_v26 = vrot.slane %v2612_v61, %v2463_v19 }
 0x4a1   : > { %v1000_v13 = vsel %vm993_vm5, %v2745_v56, %v2584_v29  ;;  %v752_v0 = vsel %vm748_vm4, %v2570_v34, %v2748_v40  ;;  %v841_v29 = vmul.f32 %v833_v42, %v2468_v46  ;;  %v1078_v49 = vmul.f32 %v2633_v6, %v998_v28 }
 0x4a2   : > { %v1097_v53 = vadd.f32 %v1050_v14, %v940_v2  ;;  %v834_v57 = vmul.f32 %v816_v16, %v752_v0  ;;  %v1114_v55 = vpack.c.bf16 %v1098_v23, %v1094_v7  ;;  %v1077_v18 = vmul.f32 %v2657_v50, %v1000_v13 }
 0x4a3   : > { %v945_v2 = vadd.f32 %v2640_v3, %v838_v5  ;;  %v948_v3 = vadd.f32 %v2607_v60, %v841_v29  ;;  %v944_v28 = vadd.f32 %v2630_v44, %v837_v10 }
 0x4a4   : > { %v718_v59 = vpop.permute.xlu1 %717  ;;  %v842_v9 = vmul.f32 %v834_v57, %v2468_v46  ;;  %v2769_v34 = vpop.permute.xlu0 %991  ;;  %1138 = vmatprep.subr.bf16.mxu0 %v1114_v55  ;;  %v1113_v16 = vpack.c.bf16 %v1097_v53, %v1093_v4  ;;  %v1085_v14 = vmul.f32 %v1077_v18, %v2548_v25 }
 0x4a5   : > { %v724_v19 = vsel %vm723_vm2, %v2637_v52, %v718_v59  ;;  %v730_v42 = vsel %vm723_vm2, %v718_v59, %v2556_v38  ;;  %v1001_v6 = vsel %vm993_vm5, %v2769_v34, %v2599_v47  ;;  %v1090_v52 = vmul.f32 %v1082_v41, %v2552_v37 }
 0x4a6   : > { %v783_v43 = vmul.f32 %v2668_v54, %v724_v19  ;;  %v949_v33 = vadd.f32 %v2626_v21, %v842_v9  ;;  %v1081_v38 = vmul.f32 %v2657_v50, %v1001_v6  ;;  %v784_v48 = vmul.f32 %v2671_v51, %v730_v42  ;;  %1139 = vmatpush1.bf16.msra.mxu0 %v1113_v16  ;;  %v3174_v19 = vld [vmem:[#allocation9_spill] sm:$0xff] }
 0x4a7   : > { %v1086_v47 = vmul.f32 %v1078_v49, %v2548_v25 }
 0x4a8   : > { %v961_v13 = vpop.permute.xlu1 %960  ;;  %v1089_v45 = vmul.f32 %v1081_v38, %v2552_v37  ;;  %v720_v61 = vpop.permute.xlu0 %719  ;;  %v1106_v7 = vadd.f32 %v1090_v52, %v949_v33  ;;  %v801_v60 = vmul.f32 %v2546_v24, %v783_v43  ;;  %v802_v5 = vmul.f32 %v2546_v24, %v784_v48  ;;  %v3175_v38 = vld [vmem:[#allocation14_spill] sm:$0xff] }
 0x4a9   : > { %v969_v21 = vsel %vm968_vm3, %v961_v13, %v2674_v36  ;;  %v971_v50 = vsel %vm968_vm3, %v2564_v15, %v961_v13  ;;  %v725_v44 = vsel %vm723_vm2, %v2684_v12, %v720_v61  ;;  %v731_v23 = vsel %vm723_vm2, %v720_v61, %v2558_v20 }
 0x4aa   : > { %v1102_v41 = vadd.f32 %v1086_v47, %v945_v2  ;;  %v787_v36 = vmul.f32 %v2668_v54, %v725_v44  ;;  %v788_v0 = vmul.f32 %v2671_v51, %v731_v23  ;;  %v1030_v15 = vmul.f32 %v2701_v17, %v971_v50 }
 0x4ab   : > { %v1105_v4 = vadd.f32 %v1089_v45, %v948_v3  ;;  %v1031_v53 = vmul.f32 %v2704_v31, %v969_v21  ;;  %v1101_v12 = vadd.f32 %v1085_v14, %v944_v28  ;;  %v938_v9 = vadd.f32 %v2504_v8, %v801_v60  ;;  %v3178_v60 = vld [vmem:[#allocation13_spill] sm:$0xff] }
 0x4ac   : > { %v1118_v57 = vpack.c.bf16 %v1106_v7, %v1102_v41  ;;  %v745_v55 = vpop.permute.xlu1 %744  ;;  %v805_v29 = vmul.f32 %v2468_v46, %v787_v36  ;;  %v806_v20 = vmul.f32 %v2468_v46, %v788_v0  ;;  %v963_v10 = vpop.permute.xlu0 %962  ;;  %v1048_v51 = vmul.f32 %v2548_v25, %v1030_v15  ;;  %v3177_v7 = vld [vmem:[#allocation11_spill] sm:$0xff] }
 0x4ad   : > { %v749_v54 = vsel %vm748_vm4, %v2714_v30, %v745_v55  ;;  %v970_v49 = vsel %vm968_vm3, %v963_v10, %v2724_v11  ;;  %v972_v18 = vsel %vm968_vm3, %v2566_v32, %v963_v10  ;;  %v755_v59 = vsel %vm748_vm4, %v745_v55, %v2573_v35 }
 0x4ae   : > { %1140 = vmatprep.subr.bf16.mxu0 %v1118_v57  ;;  %v939_v42 = vadd.f32 %v3174_v19, %v802_v5  ;;  %v1049_v30 = vmul.f32 %v2548_v25, %v1031_v53  ;;  %v1034_v16 = vmul.f32 %v2701_v17, %v972_v18  ;;  %v1035_v2 = vmul.f32 %v2704_v31, %v970_v49  ;;  %v1956_v31 = vld [vmem:[%s3145_s2] sm:$0xff]  }
 0x4af   : > { %v831_v11 = vmul.f32 %v2707_v63, %v749_v54  ;;  %v832_v6 = vmul.f32 %v2717_v27, %v755_v59  ;;  %v1117_v32 = vpack.c.bf16 %v1105_v4, %v1101_v12  ;;  %v942_v52 = vadd.f32 %v2677_v58, %v805_v29  ;;  %v3181_v12 = vld [vmem:[#allocation10_spill] sm:$0xff] }
 0x4b0   : > { %v986_v43 = vpop.permute.xlu1 %985  ;;  %v1052_v35 = vmul.f32 %v2552_v37, %v1034_v16  ;;  %v747_v33 = vpop.permute.xlu0 %746  ;;  %v943_v48 = vadd.f32 %v3175_v38, %v806_v20  ;;  %v1095_v3 = vadd.f32 %v1048_v51, %v938_v9  ;;  %v1053_v58 = vmul.f32 %v2552_v37, %v1035_v2  ;;  %v3182_v20 = vld [vmem:[#allocation15_spill] sm:$0xff] }
 0x4b1   : > { %v994_v8 = vsel %vm993_vm5, %v986_v43, %v2745_v56  ;;  %v996_v17 = vsel %vm993_vm5, %v2614_v62, %v986_v43  ;;  %1141 = vmatpush1.bf16.msra.mxu0 %v1117_v32  ;;  %v750_v28 = vsel %vm748_vm4, %v2748_v40, %v747_v33  ;;  %v3176_v56 = vld [vmem:[#allocation12_spill] sm:$0xff]  ;;  %v839_v45 = vmul.f32 %v831_v11, %v2546_v24 }
 0x4b2   : > { %v1099_v47 = vadd.f32 %v1052_v35, %v942_v52  ;;  %v756_v14 = vsel %vm748_vm4, %v747_v33, %v3176_v56  ;;  %v835_v62 = vmul.f32 %v2707_v63, %v750_v28  ;;  %v1079_v13 = vmul.f32 %v2762_v26, %v996_v17 }
 0x4b3   : > { %v840_v61 = vmul.f32 %v832_v6, %v2546_v24  ;;  %v836_v21 = vmul.f32 %v2717_v27, %v756_v14  ;;  %v1080_v50 = vmul.f32 %v2785_v1, %v994_v8  ;;  %v935_v40 = vmul.f32 %v3178_v60, %v3177_v7 }
 0x4b4   : > { %v843_v44 = vmul.f32 %v835_v62, %v2468_v46  ;;  %1837 = vmatmul.mubr.msk.bf16.vlgmr.msra.gmra.mrb[4].mxu0 %vm1131_vm6, %v1956_v31  ;;  %v988_v23 = vpop.permute.xlu0 %987  ;;  %v1100_v41 = vadd.f32 %v1053_v58, %v943_v48  ;;  %v1115_v63 = vpack.c.bf16 %v1099_v47, %v1095_v3  ;;  %v1096_v36 = vadd.f32 %v1049_v30, %v939_v42 }
 0x4b5   : > { %v844_v5 = vmul.f32 %v836_v21, %v2468_v46  ;;  %v995_v24 = vsel %vm993_vm5, %v988_v23, %v2769_v34  ;;  %v997_v27 = vsel %vm993_vm5, %v2647_v39, %v988_v23  ;;  %v3179_v0 = vmov 0   ;;  %v3180_v46 = vld [vmem:[#allocation8_spill] sm:$0xff] }
 0x4b6   : > { %1180 = vmatprep.mubr.bf16.mxu0 %v3179_v0  ;;  %v1087_v15 = vmul.f32 %v1079_v13, %v2548_v25  ;;  %v1088_v4 = vmul.f32 %v1080_v50, %v2548_v25  ;;  %v1083_v53 = vmul.f32 %v2762_v26, %v997_v27  ;;  %v1084_v57 = vmul.f32 %v2785_v1, %v995_v24  ;;  %v1957_v25 = vld [vmem:[%s3145_s2 + $0x8] sm:$0xff]  }
 0x4b7   : > { %v946_v55 = vadd.f32 %v3180_v46, %v839_v45  ;;  %v947_v29 = vadd.f32 %v3181_v12, %v840_v61  ;;  %v1116_v34 = vpack.c.bf16 %v1100_v41, %v1096_v36  ;;  %v950_v10 = vadd.f32 %v3182_v20, %v843_v44 }
 0x4b8   : > { %v951_v22 = vadd.f32 %v935_v40, %v844_v5  ;;  %v1091_v39 = vmul.f32 %v1083_v53, %v2552_v37  ;;  %v1092_v54 = vmul.f32 %v1084_v57, %v2552_v37 }
 0x4b9   : > { %1191 = vmatprep.subr.bf16.mxu1 %v1116_v34  ;;  %v1103_v26 = vadd.f32 %v1087_v15, %v946_v55  ;;  %v1104_v1 = vadd.f32 %v1088_v4, %v947_v29 }
 0x4ba   : > { %v1107_v51 = vadd.f32 %v1091_v39, %v950_v10  ;;  %1192 = vmatpush1.bf16.msra.mxu1 %v1115_v63  ;;  %v1108_v49 = vadd.f32 %v1092_v54, %v951_v22 }
 0x4bc   : > { %1838 = vmatmul.mubr.msk.bf16.gmra.mrb[8].mxu0 %vm1131_vm6, %v1957_v25  ;;  %v1120_v18 = vpack.c.bf16 %v1108_v49, %v1104_v1  ;;  %v1119_v59 = vpack.c.bf16 %v1107_v51, %v1103_v26 }
 0x4bd   : > { %1666 = vmatprep.mubr.bf16.mxu0 %v3179_v0 }
 0x4be   : > { %1193 = vmatprep.subr.bf16.mxu1 %v1120_v18 }
 0x4bf   : > { %1194 = vmatpush1.bf16.msra.mxu1 %v1119_v59 }
 0x4c1   : > { %v1246_v37 = vpop.permute.xlu1 %1245 }
 0x4c2   : > { %1839 = vmatmul.mubr.msk.bf16.vlgmr.msra.gmra.mrb[4].mxu1 %vm1131_vm6, %v1956_v31 }
 0x4c3   : > { %1233 = vmatprep.mubr.bf16.mxu1 %v3179_v0 }
 0x4c5   : > { %v1250_v19 = vpop.permute.xlu0 %1249 }
 0x4c6   : > { %v2895_v11 = vpop.permute.xlu1 %1333 }
 0x4ca   : > { %1840 = vmatmul.mubr.msk.bf16.gmra.mrb[8].mxu1 %vm1131_vm6, %v1957_v25  ;;  %v2909_v58 = vpop.permute.xlu1 %1337 }
 0x4cb   : > { %1709 = vmatprep.mubr.bf16.mxu1 %v3179_v0 }
 0x587   : > { %v1172_v9 = vpop.f32.mrb[4].mxu0 }
 0x588   : > { %v2891_v42 = vadd.f32 %v1246_v37, %v1172_v9  ;;  %v1174_v30 = vpop.f32.mrb[5].mxu0 }
 0x589   : > { %v2893_v16 = vadd.f32 %v1246_v37, %v1174_v30  ;;  %v1176_v2 = vpop.f32.mrb[6].mxu0 }
 0x58a   : > { %v1268_v6 = vmul.f32 0.044715, %v2891_v42  ;;  %v2898_v32 = vadd.f32 %v1250_v19, %v1176_v2  ;;  %v1178_v43 = vpop.f32.mrb[7].mxu0 }
 0x58b   : > { %v1269_v52 = vmul.f32 0.044715, %v2893_v16  ;;  %v2901_v35 = vadd.f32 %v1250_v19, %v1178_v43 }
 0x58c   : > { %v1272_v33 = vmul.f32 0.044715, %v2898_v32  ;;  %v1276_v8 = vmul.f32 %v1268_v6, %v2891_v42 }
 0x58d   : > { %v1277_v17 = vmul.f32 %v1269_v52, %v2893_v16  ;;  %v1273_v31 = vmul.f32 0.044715, %v2901_v35 }
 0x58e   : > { %v1284_v38 = vmul.f32 %v1276_v8, %v2891_v42  ;;  %v1280_v28 = vmul.f32 %v1272_v33, %v2898_v32  ;;  %v1260_v8 = vmul.f32 0.5, %v2891_v42 }
 0x58f   : > { %v1285_v48 = vmul.f32 %v1277_v17, %v2893_v16  ;;  %v1182_v3 = vpop.f32.mrb[8].mxu0  ;;  %v1281_v13 = vmul.f32 %v1273_v31, %v2901_v35 }
 0x590   : > { %v2913_v47 = vadd.f32 %v2895_v11, %v1182_v3  ;;  %v1184_v56 = vpop.f32.mrb[9].mxu0  ;;  %v1292_v14 = vadd.f32 %v1284_v38, %v2891_v42  ;;  %v1288_v41 = vmul.f32 %v1280_v28, %v2898_v32 }
 0x591   : > { %v1293_v62 = vadd.f32 %v1285_v48, %v2893_v16  ;;  %v2919_v45 = vadd.f32 %v2895_v11, %v1184_v56  ;;  %v1186_v61 = vpop.f32.mrb[10].mxu0  ;;  %v1289_v24 = vmul.f32 %v1281_v13, %v2901_v35  ;;  %v1261_v48 = vmul.f32 0.5, %v2893_v16 }
 0x592   : > { %v1356_v21 = vmul.f32 0.044715, %v2913_v47  ;;  %v2923_v50 = vadd.f32 %v2909_v58, %v1186_v61  ;;  %v1188_v7 = vpop.f32.mrb[11].mxu0  ;;  %v1300_v60 = vmul.f32 0.7978846, %v1292_v14  ;;  %v1296_v34 = vadd.f32 %v1288_v41, %v2898_v32 }
 0x593   : > { %v1357_v40 = vmul.f32 0.044715, %v2919_v45  ;;  %v2927_v44 = vadd.f32 %v2909_v58, %v1188_v7  ;;  %v1301_v23 = vmul.f32 0.7978846, %v1293_v62  ;;  %v1297_v54 = vadd.f32 %v1289_v24, %v2901_v35 }
 0x594   : > { %v1364_v63 = vmul.f32 %v1356_v21, %v2913_v47  ;;  %v1360_v5 = vmul.f32 0.044715, %v2923_v50  ;;  %1979 = vtanh.f32 %v1300_v60  ;;  %v1304_v43 = vmul.f32 0.7978846, %v1296_v34 }
 0x595   : > { %v1365_v27 = vmul.f32 %v1357_v40, %v2919_v45  ;;  %v1361_v36 = vmul.f32 0.044715, %v2927_v44  ;;  %v1225_v0 = vpop.f32.mrb[4].mxu1  ;;  %1981 = vtanh.f32 %v1301_v23  ;;  %v1305_v3 = vmul.f32 0.7978846, %v1297_v54 }
 0x596   : > { %v1372_v15 = vmul.f32 %v1364_v63, %v2913_v47  ;;  %v1368_v4 = vmul.f32 %v1360_v5, %v2923_v50  ;;  %v2937_v53 = vadd.f32 %v1246_v37, %v1225_v0  ;;  %v1227_v57 = vpop.f32.mrb[5].mxu1  ;;  %v1348_v42 = vmul.f32 0.5, %v2913_v47 }
 0x597   : > { %v1373_v46 = vmul.f32 %v1365_v27, %v2919_v45  ;;  %v1369_v55 = vmul.f32 %v1361_v36, %v2927_v44  ;;  %v2941_v12 = vadd.f32 %v1246_v37, %v1227_v57  ;;  %v1229_v29 = vpop.f32.mrb[6].mxu1 }
 0x598   : > { %v1380_v20 = vadd.f32 %v1372_v15, %v2913_v47  ;;  %v1270_v10 = vmul.f32 0.044715, %v2937_v53  ;;  %v2946_v22 = vadd.f32 %v1250_v19, %v1229_v29  ;;  %v1231_v39 = vpop.f32.mrb[7].mxu1  ;;  %v1376_v1 = vmul.f32 %v1368_v4, %v2923_v50 }
 0x599   : > { %v1381_v25 = vadd.f32 %v1373_v46, %v2919_v45  ;;  %v1271_v26 = vmul.f32 0.044715, %v2941_v12  ;;  %v2951_v51 = vadd.f32 %v1250_v19, %v1231_v39  ;;  %v1377_v37 = vmul.f32 %v1369_v55, %v2927_v44 }
 0x59a   : > { %v1278_v49 = vmul.f32 %v1270_v10, %v2937_v53  ;;  %v1274_v18 = vmul.f32 0.044715, %v2946_v22  ;;  %v1388_v59 = vmul.f32 0.7978846, %v1380_v20  ;;  %v1384_v28 = vadd.f32 %v1376_v1, %v2923_v50 }
 0x59b   : > { %v1279_v9 = vmul.f32 %v1271_v26, %v2941_v12  ;;  %v1275_v30 = vmul.f32 0.044715, %v2951_v51  ;;  %v1389_v2 = vmul.f32 0.7978846, %v1381_v25  ;;  %v1385_v56 = vadd.f32 %v1377_v37, %v2927_v44 }
 0x59c   : > { %v1286_v6 = vmul.f32 %v1278_v49, %v2937_v53  ;;  %1983 = vtanh.f32 %v1388_v59  ;;  %v1282_v52 = vmul.f32 %v1274_v18, %v2946_v22  ;;  %v1392_v36 = vmul.f32 0.7978846, %v1384_v28 }
 0x59d   : > { %v1287_v19 = vmul.f32 %v1279_v9, %v2941_v12  ;;  %v1235_v33 = vpop.f32.mrb[8].mxu1  ;;  %1985 = vtanh.f32 %v1389_v2  ;;  %v1283_v17 = vmul.f32 %v1275_v30, %v2951_v51  ;;  %v1393_v0 = vmul.f32 0.7978846, %v1385_v56 }
 0x59e   : > { %v2965_v31 = vadd.f32 %v2895_v11, %v1235_v33  ;;  %v1237_v38 = vpop.f32.mrb[9].mxu1  ;;  %v1980_v13 = vpop.eup %1979  ;;  %v1294_v61 = vadd.f32 %v1286_v6, %v2937_v53  ;;  %1987 = vtanh.f32 %v1304_v43  ;;  %v1290_v23 = vmul.f32 %v1282_v52, %v2946_v22 }
 0x59f   : > { %v2971_v14 = vadd.f32 %v2895_v11, %v1237_v38  ;;  %v1239_v62 = vpop.f32.mrb[10].mxu1  ;;  %v1982_v60 = vpop.eup %1981  ;;  %v1295_v40 = vadd.f32 %v1287_v19, %v2941_v12  ;;  %v1291_v47 = vmul.f32 %v1283_v17, %v2951_v51  ;;  %1989 = vtanh.f32 %v1305_v3 }
 0x5a0   : > { %v1358_v21 = vmul.f32 0.044715, %v2965_v31  ;;  %v2977_v7 = vadd.f32 %v2909_v58, %v1239_v62  ;;  %v1241_v16 = vpop.f32.mrb[11].mxu1  ;;  %v1316_v57 = vadd.f32 1.0, %v1980_v13  ;;  %1991 = vtanh.f32 %v1392_v36 }
 0x5a1   : > { %v1359_v11 = vmul.f32 0.044715, %v2971_v14  ;;  %v2983_v41 = vadd.f32 %v2909_v58, %v1241_v16  ;;  %v1317_v58 = vadd.f32 1.0, %v1982_v60  ;;  %v1302_v29 = vmul.f32 0.7978846, %v1294_v61 }
 0x5a2   : > { %v1366_v63 = vmul.f32 %v1358_v21, %v2965_v31  ;;  %v1362_v5 = vmul.f32 0.044715, %v2977_v7  ;;  %1993 = vtanh.f32 %v1393_v0  ;;  %v1303_v39 = vmul.f32 0.7978846, %v1295_v40 }
 0x5a3   : > { %v1367_v24 = vmul.f32 %v1359_v11, %v2971_v14  ;;  %v1363_v27 = vmul.f32 0.044715, %v2983_v41  ;;  %v1298_v25 = vadd.f32 %v1290_v23, %v2946_v22  ;;  %v1299_v18 = vadd.f32 %v1291_v47, %v2951_v51 }
 0x5a4   : > { %v1374_v15 = vmul.f32 %v1366_v63, %v2965_v31  ;;  %v1370_v4 = vmul.f32 %v1362_v5, %v2977_v7  ;;  %v1349_v59 = vmul.f32 0.5, %v2919_v45  ;;  %1995 = vtanh.f32 %v1302_v29 }
 0x5a5   : > { %v1375_v46 = vmul.f32 %v1367_v24, %v2971_v14  ;;  %v1371_v55 = vmul.f32 %v1363_v27, %v2983_v41  ;;  %v1324_v9 = vmul.f32 %v1316_v57, %v1260_v8  ;;  %v1325_v30 = vmul.f32 %v1317_v58, %v1261_v48 }
 0x5a6   : > { %v1984_v34 = vpop.eup %1983  ;;  %v1382_v20 = vadd.f32 %v1374_v15, %v2965_v31  ;;  %v1378_v10 = vmul.f32 %v1370_v4, %v2977_v7  ;;  %1997 = vtanh.f32 %v1303_v39  ;;  %v1306_v3 = vmul.f32 0.7978846, %v1298_v25 }
 0x5a7   : > { %v1986_v54 = vpop.eup %1985  ;;  %v1383_v26 = vadd.f32 %v1375_v46, %v2971_v14  ;;  %v1379_v1 = vmul.f32 %v1371_v55, %v2983_v41  ;;  %v1404_v49 = vadd.f32 1.0, %v1984_v34  ;;  %v1307_v45 = vmul.f32 0.7978846, %v1299_v18 }
 0x5a8   : > { %v1405_v37 = vadd.f32 1.0, %v1986_v54  ;;  %v1988_v6 = vpop.eup %1987  ;;  %v1386_v43 = vadd.f32 %v1378_v10, %v2977_v7  ;;  %v1390_v52 = vmul.f32 0.7978846, %v1382_v20  ;;  %v1264_v40 = vmul.f32 0.5, %v2898_v32 }
 0x5a9   : > { %v1412_v2 = vmul.f32 %v1404_v49, %v1348_v42  ;;  %v1391_v33 = vmul.f32 0.7978846, %v1383_v26  ;;  %v1387_v17 = vadd.f32 %v1379_v1, %v2983_v41  ;;  %v1990_v28 = vpop.eup %1989  ;;  %v1320_v8 = vadd.f32 1.0, %v1988_v6 }
 0x5aa   : > { %v1413_v19 = vmul.f32 %v1405_v37, %v1349_v59  ;;  %1999 = vtanh.f32 %v1390_v52  ;;  %v1394_v13 = vmul.f32 0.7978846, %v1386_v43  ;;  %v1992_v61 = vpop.eup %1991  ;;  %v1321_v21 = vadd.f32 1.0, %v1990_v28 }
 0x5ab   : > { %v3003_v38 = vadd.f32 %v1412_v2, %v1324_v9  ;;  %2001 = vtanh.f32 %v1391_v33  ;;  %v1395_v16 = vmul.f32 0.7978846, %v1387_v17  ;;  %v1352_v23 = vmul.f32 0.5, %v2923_v50 }
 0x5ac   : > { %v3005_v56 = vadd.f32 %v1413_v19, %v1325_v30  ;;  %2003 = vtanh.f32 %v1306_v3  ;;  %v1994_v60 = vpop.eup %1993  ;;  %v1408_v11 = vadd.f32 1.0, %v1992_v61  ;;  %v1265_v47 = vmul.f32 0.5, %v2901_v35 }
 0x5ad   : > { %v1434_v48 = vmul.f32 %v3003_v38, %v3003_v38  ;;  %2005 = vtanh.f32 %v1307_v45  ;;  %v1353_v63 = vmul.f32 0.5, %v2927_v44  ;;  %v1409_v5 = vadd.f32 1.0, %v1994_v60 }
 0x5ae   : > { %v1428_v62 = vadd.f32 %v3005_v56, %v3003_v38  ;;  %v1435_v42 = vmul.f32 %v3005_v56, %v3005_v56  ;;  %2007 = vtanh.f32 %v1394_v13  ;;  %v1996_v24 = vpop.eup %1995  ;;  %v1328_v27 = vmul.f32 %v1320_v8, %v1264_v40 }
 0x5af   : > { %2009 = vtanh.f32 %v1395_v16  ;;  %v1416_v36 = vmul.f32 %v1408_v11, %v1352_v23  ;;  %v1329_v4 = vmul.f32 %v1321_v21, %v1265_v47  ;;  %v1417_v57 = vmul.f32 %v1409_v5, %v1353_v63 }
 0x5b0   : > { %1429 = vadd.xlane.f32.xlu0 %v1428_v62  ;;  %v1438_v0 = vadd.f32 %v1435_v42, %v1434_v48  ;;  %v1998_v15 = vpop.eup %1997  ;;  %v1318_v50 = vadd.f32 1.0, %v1996_v24  ;;  %v1262_v44 = vmul.f32 0.5, %v2937_v53  ;;  %v1350_v10 = vmul.f32 0.5, %v2965_v31 }
 0x5b1   : > { %v3017_v58 = vadd.f32 %v1416_v36, %v1328_v27  ;;  %v3019_v32 = vadd.f32 %v1417_v57, %v1329_v4  ;;  %v1319_v55 = vadd.f32 1.0, %v1998_v15  ;;  %v1263_v25 = vmul.f32 0.5, %v2941_v12 }
 0x5b2   : > { %v1351_v26 = vmul.f32 0.5, %v2971_v14  ;;  %v1326_v18 = vmul.f32 %v1318_v50, %v1262_v44  ;;  %v1266_v6 = vmul.f32 0.5, %v2946_v22  ;;  %v1267_v12 = vmul.f32 0.5, %v2951_v51 }
 0x5b3   : > { %v1436_v35 = vmul.f32 %v3017_v58, %v3017_v58  ;;  %v1431_v34 = vadd.f32 %v3019_v32, %v3017_v58  ;;  %v1437_v20 = vmul.f32 %v3019_v32, %v3019_v32  ;;  %v1327_v30 = vmul.f32 %v1319_v55, %v1263_v25 }
 0x5b4   : > { %1439 = vadd.xlane.f32.xlu0 %v1438_v0  ;;  %v2000_v46 = vpop.eup %1999  ;;  %v1354_v14 = vmul.f32 0.5, %v2977_v7  ;;  %v1355_v17 = vmul.f32 0.5, %v2983_v41 }
 0x5b5   : > { %v2002_v29 = vpop.eup %2001  ;;  %v1406_v39 = vadd.f32 1.0, %v2000_v46  ;;  %1432 = vadd.xlane.f32.xlu1 %v1431_v34  ;;  %v1441_v53 = vadd.f32 %v1437_v20, %v1436_v35 }
 0x5b6   : > { %v2004_v54 = vpop.eup %2003  ;;  %v1407_v1 = vadd.f32 1.0, %v2002_v29 }
 0x5b7   : > { %v2006_v49 = vpop.eup %2005  ;;  %v1414_v59 = vmul.f32 %v1406_v39, %v1350_v10  ;;  %v1322_v37 = vadd.f32 1.0, %v2004_v54 }
 0x5b8   : > { %v2008_v9 = vpop.eup %2007  ;;  %v1415_v2 = vmul.f32 %v1407_v1, %v1351_v26  ;;  %v1323_v43 = vadd.f32 1.0, %v2006_v49  ;;  %1442 = vadd.xlane.f32.xlu0 %v1441_v53 }
 0x5b9   : > { %v2010_v31 = vpop.eup %2009  ;;  %v3032_v19 = vadd.f32 %v1414_v59, %v1326_v18  ;;  %v1410_v52 = vadd.f32 1.0, %v2008_v9  ;;  %v1330_v28 = vmul.f32 %v1322_v37, %v1266_v6 }
 0x5ba   : > { %v3036_v33 = vadd.f32 %v1415_v2, %v1327_v30  ;;  %v1411_v3 = vadd.f32 1.0, %v2010_v31  ;;  %v1331_v45 = vmul.f32 %v1323_v43, %v1267_v12  ;;  %v2128_v30 = vmov 5  }
 0x5bb   : > { %v1418_v8 = vmul.f32 %v1410_v52, %v1354_v14  ;;  %v1526_v62 = vmul.f32 %v3032_v19, %v3032_v19  ;;  %1949 = vset.pattern.permute.xlu0 %v2128_v30  ;;  %1950 = vset.pattern.permute.xlu1 %v2128_v30 }
 0x5bc   : > { %v1520_v22 = vadd.f32 %v3036_v33, %v3032_v19  ;;  %v1419_v48 = vmul.f32 %v1411_v3, %v1355_v17  ;;  %v1527_v51 = vmul.f32 %v3036_v33, %v3036_v33 }
 0x5bd   : > { %v3045_v7 = vadd.f32 %v1418_v8, %v1330_v28 }
 0x5be   : > { %1521 = vadd.xlane.f32.xlu1 %v1520_v22  ;;  %v3047_v42 = vadd.f32 %v1419_v48, %v1331_v45  ;;  %v1530_v13 = vadd.f32 %v1527_v51, %v1526_v62 }
 0x5bf   : > { %v1528_v61 = vmul.f32 %v3045_v7, %v3045_v7 }
 0x5c0   : > { %v1523_v41 = vadd.f32 %v3047_v42, %v3045_v7  ;;  %v1529_v21 = vmul.f32 %v3047_v42, %v3047_v42 }
 0x5c2   : > { %1524 = vadd.xlane.f32.xlu0 %v1523_v41  ;;  %1531 = vadd.xlane.f32.xlu1 %v1530_v13  ;;  %v1533_v16 = vadd.f32 %v1529_v21, %v1528_v61  ;;  %v2015_v13 = vld [vmem:[%s3147_s4] sm:$0xff]  ;;  %v2016_v21 = vld [vmem:[%s3147_s4 + $0x8] sm:$0xff] }
 0x5c6   : > { %1534 = vadd.xlane.f32.xlu0 %v1533_v16 }
 0x63d   : > { %v1430_v60 = vpop.xlane.xlu0 %1429 }
 0x63e   : > { %v1444_v11 = vsel %vm464_vm1, %v1430_v60, 0.0 }
 0x641   : > { %v1440_v40 = vpop.xlane.xlu0 %1439 }
 0x642   : > { %v1433_v23 = vpop.xlane.xlu1 %1432  ;;  %v1457_v24 = vsel %vm464_vm1, %v1440_v40, 0.0 }
 0x643   : > { %v1445_v47 = vsel %vm464_vm1, %v1433_v23, 0.0 }
 0x644   : > { %v1446_v63 = vadd.f32 %v1445_v47, %v1444_v11 }
 0x645   : > { %v1443_v5 = vpop.xlane.xlu0 %1442 }
 0x646   : > { %v1458_v27 = vsel %vm464_vm1, %v1443_v5, 0.0  ;;  %1447 = vadd.xlane.f32.xlu1 %v1446_v63 }
 0x647   : > { %v1459_v36 = vadd.f32 %v1458_v27, %v1457_v24 }
 0x649   : > { %1460 = vadd.xlane.f32.xlu0 %v1459_v36 }
 0x64b   : > { %v1522_v0 = vpop.xlane.xlu1 %1521 }
 0x64c   : > { %v1536_v4 = vsel %vm464_vm1, %v1522_v0, 0.0 }
 0x64f   : > { %v1525_v15 = vpop.xlane.xlu0 %1524  ;;  %v1532_v50 = vpop.xlane.xlu1 %1531 }
 0x650   : > { %v1537_v57 = vsel %vm464_vm1, %v1525_v15, 0.0  ;;  %v1549_v44 = vsel %vm464_vm1, %v1532_v50, 0.0  ;;  %v2129_v15 = vmov 6  }
 0x651   : > { %v1538_v46 = vadd.f32 %v1537_v57, %v1536_v4 }
 0x653   : > { %v1535_v35 = vpop.xlane.xlu0 %1534  ;;  %1539 = vadd.xlane.f32.xlu1 %v1538_v46 }
 0x654   : > { %v1550_v55 = vsel %vm464_vm1, %v1535_v35, 0.0 }
 0x655   : > { %v1551_v29 = vadd.f32 %v1550_v55, %v1549_v44 }
 0x657   : > { %1552 = vadd.xlane.f32.xlu0 %v1551_v29 }
 0x6d3   : > { %v1448_v34 = vpop.xlane.xlu1 %1447 }
 0x6d4   : > { %v1449_v20 = vrot.slane %v1448_v34, 4 }
 0x6d6   : > { %v1461_v10 = vpop.xlane.xlu0 %1460  ;;  %v1450_v39 = vadd.f32 %v1449_v20, %v1448_v34  ;;  %v2130_v34 = vmov 7  }
 0x6d7   : > { %v1462_v54 = vrot.slane %v1461_v10, 4 }
 0x6d8   : > { %v1451_v25 = vrot.slane %v1450_v39, 2 }
 0x6d9   : > { %v1463_v26 = vadd.f32 %v1462_v54, %v1461_v10 }
 0x6da   : > { %v1452_v49 = vadd.f32 %v1451_v25, %v1450_v39 }
 0x6db   : > { %v1464_v1 = vrot.slane %v1463_v26, 2 }
 0x6dc   : > { %v1453_v53 = vrot.slane %v1452_v49, 1 }
 0x6dd   : > { %v1465_v18 = vadd.f32 %v1464_v1, %v1463_v26 }
 0x6de   : > { %v1454_v59 = vadd.f32 %v1453_v53, %v1452_v49 }
 0x6df   : > { %v1466_v37 = vrot.slane %v1465_v18, 1 }
 0x6e0   : > { %1863 = vpush %v1454_v59  ;;  %v1540_v2 = vpop.xlane.xlu1 %1539 }
 0x6e1   : > { %v1467_v9 = vadd.f32 %v1466_v37, %v1465_v18  ;;  %v1541_v43 = vrot.slane %v1540_v2, 4 }
 0x6e3   : > { %1865 = vpush %v1467_v9  ;;  %v1542_v12 = vadd.f32 %v1541_v43, %v1540_v2  ;;  %v1958_v43 = vld [vmem:[%s3146_s3] sm:$0xff]  }
 0x6e4   : > { %v1553_v6 = vpop.xlane.xlu0 %1552 }
 0x6e5   : > { %v1554_v31 = vrot.slane %v1553_v6, 4  ;;  %v1543_v52 = vrot.slane %v1542_v12, 2 }
 0x6e7   : > { %v1555_v14 = vadd.f32 %v1554_v31, %v1553_v6  ;;  %v1544_v28 = vadd.f32 %v1543_v52, %v1542_v12 }
 0x6e9   : > { %v1556_v17 = vrot.slane %v1555_v14, 2  ;;  %v1545_v8 = vrot.slane %v1544_v28, 1 }
 0x6eb   : > { %v1557_v45 = vadd.f32 %v1556_v17, %v1555_v14  ;;  %v1546_v62 = vadd.f32 %v1545_v8, %v1544_v28 }
 0x6ed   : > { %v1558_v22 = vrot.slane %v1557_v45, 1 }
 0x6ef   : > { %v1559_v51 = vadd.f32 %v1558_v22, %v1557_v45 }
 0x711   : > { %s1864_s26 = spop %1863 }
 0x712   : > { %s3063_s10 = smul.f32 0.00024414063, %s1864_s26 }
 0x714   : > { %s1866_s12 = spop %1865  ;;  %s1470_s20 = smul.f32 %s3063_s10, %s3063_s10  ;;  %v1479_v60 = vstv %s3063_s10 }
 0x715   : > { %s1469_s13 = smul.f32 0.00024414063, %s1866_s12  ;;  %s3184_s10 = sshll.u32 %s2286_s23, 6 }
 0x717   : > { %s1471_s22 = ssub.f32 %s1469_s13, %s1470_s20  ;;  %s1850_s20 = sshll.u32 %s2201_s9, 9 }
 0x718   : > { %s1729_s9 = scalar_lea.sflag [#allocation4], %s2286_s23 }
 0x719   : > { %s1472_s25 = sadd.f32 1e-05, %s1471_s22 }
 0x71b   : > { %v1473_v3 = vstv %s1472_s25 }
 0x71c   : > { %2011 = vrsqrt.f32 %v1473_v3 }
 0x726   : > { %v2012_v48 = vpop.eup %2011 }
 0x727   : > { %1867 = vpush %v2012_v48 }
 0x728   : > { %1869 = vpush %v1546_v62 }
 0x729   : > { %1871 = vpush %v1559_v51 }
 0x758   : > { %s1868_s16 = spop %1867 }
 0x759   : > { %v1476_v41 = vstv %s1868_s16  ;;  %s1870_s24 = spop %1869  ;;  %s3183_s16 = smov 1  }
 0x75a   : > { %v1477_v61 = vmul.f32 %v2015_v13, %v1476_v41  ;;  %v1478_v16 = vmul.f32 %v2016_v21, %v1476_v41  ;;  %s1548_s13 = smul.f32 0.00024414063, %s1870_s24  ;;  %s1872_s22 = spop %1871 }
 0x75b   : > { %s1561_s25 = smul.f32 0.00024414063, %s1872_s22  ;;  %s323_s24 = scalar_lea.vmem [#allocation5], %s3184_s10 }
 0x75c   : > { %v1480_v40 = vmul.f32 %v1479_v60, %v1477_v61  ;;  %v1481_v23 = vmul.f32 %v1479_v60, %v1478_v16  ;;  %s1562_s19 = smul.f32 %s1548_s13, %s1548_s13  ;;  %v1571_v27 = vstv %s1548_s13  ;;  %s1742_s12 = sshll.u32 %s323_s24, 4  ;;  %s3094_s12 = int_to_ptr.vmem [resolvable:$true] %s1742_s12 }
 0x75e   : > { %s1563_s15 = ssub.f32 %s1561_s25, %s1562_s19  ;;  %1486 = vrot.lane.b32.xlu0 %v1481_v23, %s3183_s16  ;;  %1484 = vrot.lane.b32.xlu1 %v1480_v40, %s3183_s16  ;;  %s3099_s25 = scalar_lea.hbm %s3151_s8, %s1850_s20 }
 0x760   : > { %s1564_s21 = sadd.f32 1e-05, %s1563_s15 }
 0x762   : > { %v1565_v11 = vstv %s1564_s21  ;;  %1494 = vperm.xlu0 %1949, %v1477_v61   ;;  %s2131_s21 = smov [#allocation5]  }
 0x763   : > { %2013 = vrsqrt.f32 %v1565_v11 }
 0x76d   : > { %v2014_v47 = vpop.eup %2013 }
 0x76e   : > { %1873 = vpush %v2014_v47 }
 0x79f   : > { %s1874_s26 = spop %1873 }
 0x7a0   : > { %v1568_v63 = vstv %s1874_s26  ;;  %s2051_s26 = sshll.u32 %s2131_s21, 4  ;;  %s2052_s26 = int_to_ptr.vmem [resolvable:$false] %s2051_s26 }
 0x7a1   : > { %v1569_v5 = vmul.f32 %v2015_v13, %v1568_v63  ;;  %v1570_v24 = vmul.f32 %v2016_v21, %v1568_v63  ;;  %s2053_s19 = scalar_lea.vmem %s2052_s26, 2048  ;;  %p2054_p4 = scmp.lt.s32.totalorder %s3094_s12, %s2052_s26 }
 0x7a3   : > { %v1572_v36 = vmul.f32 %v1571_v27, %v1569_v5  ;;  %1591 = vperm.xlu0 %1949, %v1570_v24   ;;  %v1573_v0 = vmul.f32 %v1571_v27, %v1570_v24 }
 0x7a5   : > { %1576 = vrot.lane.b32.xlu1 %v1572_v36, %s3183_s16 }
 0x7a7   : > { %1952 = vset.pattern.permute.xlu0 %v2129_v15 }
 0x7a9   : > { %1578 = vrot.lane.b32.xlu1 %v1573_v0, %s3183_s16  ;;  %s2047_s16 = scalar_lea.vmem %s3094_s12, 1024 }
 0x7aa   : > { %p2048_p6 = scmp.ne.s32.totalorder %s3094_s12, %s2047_s16  ;;  %p2055_p10 = scmp.lt.s32.totalorder %s2053_s19, %s2047_s16 }
 0x7ac   : > { %p2049_p12 = pnand %p2048_p6, %p3185_p11  ;;  %p2056_p1 = por %p2055_p10, %p2054_p4 }
 0x7ad   : > { %1499 = vperm.xlu1 %1950, %v1478_v16  }
 0x7ae   : > { %p2050_p13 = pneg %p2049_p12 }
 0x7b0   : > { %p2057_p3 = pnand %p2056_p1, %p2050_p13 }
 0x7b1   : > { %1586 = vperm.xlu1 %1950, %v1569_v5  }
 0x7b5   : > { %1951 = vset.pattern.permute.xlu1 %v2129_v15 }
 0x7d0   : > { %v1487_v4 = vpop.permute.xlu0 %1486  ;;  %v1485_v57 = vpop.permute.xlu1 %1484 }
 0x7d1   : > { %v1491_v50 = vsub.f32 %v2016_v21, %v1487_v4  ;;  %v1490_v46 = vsub.f32 %v2015_v13, %v1485_v57 }
 0x7d3   : > { %1513 = vperm.xlu0 %1952, %v1491_v50   ;;  %1508 = vperm.xlu1 %1951, %v1490_v46  }
 0x7d7   : > { %1953 = vset.pattern.permute.xlu0 %v2130_v34 }
 0x7d8   : > { %1619 = vperm.xlu0 %1953, %v2015_v13  }
 0x7e1   : > { %v1495_v10 = vpop.permute.xlu0 %1494 }
 0x7e2   : > { %v1502_v25 = vmul.f32 %v1495_v10, %v3003_v38  ;;  %v1503_v26 = vmul.f32 %v1495_v10, %v3005_v56 }
 0x817   : > { %v1577_v35 = vpop.permute.xlu1 %1576 }
 0x818   : > { %v1582_v44 = vsub.f32 %v2015_v13, %v1577_v35 }
 0x81a   : > { %1600 = vperm.xlu1 %1951, %v1582_v44  }
 0x81b   : > { %v1579_v55 = vpop.permute.xlu1 %1578 }
 0x81c   : > { %v1583_v29 = vsub.f32 %v2016_v21, %v1579_v55 }
 0x81e   : > { %1605 = vperm.xlu1 %1951, %v1583_v29  }
 0x822   : > { %1954 = vset.pattern.permute.xlu1 %v2130_v34  ;;  %v1592_v39 = vpop.permute.xlu0 %1591 }
 0x823   : > { %1623 = vperm.xlu1 %1954, %v2016_v21   ;;  %v1596_v56 = vmul.f32 %v1592_v39, %v3045_v7 }
 0x82c   : > { %v1500_v20 = vpop.permute.xlu1 %1499 }
 0x82d   : > { %v1504_v1 = vmul.f32 %v1500_v20, %v3017_v58  ;;  %v1505_v49 = vmul.f32 %v1500_v20, %v3019_v32  ;;  %v1597_v58 = vmul.f32 %v1592_v39, %v3047_v42 }
 0x830   : > { %v1587_v54 = vpop.permute.xlu1 %1586 }
 0x831   : > { %v1594_v32 = vmul.f32 %v1587_v54, %v3032_v19  ;;  %v1595_v31 = vmul.f32 %v1587_v54, %v3036_v33 }
 0x852   : > { %v1514_v53 = vpop.permute.xlu0 %1513  ;;  %v1509_v18 = vpop.permute.xlu1 %1508 }
 0x853   : > { %v1518_v59 = vadd.f32 %v1514_v53, %v1504_v1  ;;  %v1519_v37 = vadd.f32 %v1514_v53, %v1505_v49  ;;  %v1516_v9 = vadd.f32 %v1509_v18, %v1502_v25  ;;  %v1517_v30 = vadd.f32 %v1509_v18, %v1503_v26 }
 0x855   : > { %v1614_v2 = vpack.c.bf16 %v1518_v59, %v1516_v9  ;;  %v1615_v6 = vpack.c.bf16 %v1519_v37, %v1517_v30 }
 0x857   : > { %1634 = vmatprep.subr.bf16.mxu0 %v1615_v6  ;;  %v1620_v8 = vpop.permute.xlu0 %1619 }
 0x858   : > { %1635 = vmatpush1.bf16.msra.mxu0 %v1614_v2 }
 0x85b   : > { %1842 = vmatmul.mubr.msk.bf16.vlgmr.msra.gmra.mrb[12].mxu0 %vm358_vm0, %v1958_v43 }
 0x899   : > { %v1601_v38 = vpop.permute.xlu1 %1600 }
 0x89a   : > { %v1608_v14 = vadd.f32 %v1601_v38, %v1594_v32  ;;  %v1609_v52 = vadd.f32 %v1601_v38, %v1595_v31 }
 0x89d   : > { %v1606_v12 = vpop.permute.xlu1 %1605 }
 0x89e   : > { %v1610_v17 = vadd.f32 %v1606_v12, %v1596_v56  ;;  %v1611_v3 = vadd.f32 %v1606_v12, %v1597_v58 }
 0x8a0   : > { %v1616_v28 = vpack.c.bf16 %v1610_v17, %v1608_v14  ;;  %v1617_v45 = vpack.c.bf16 %v1611_v3, %v1609_v52 }
 0x8a2   : > { %1677 = vmatprep.subr.bf16.mxu1 %v1617_v45  ;;  %v1624_v42 = vpop.permute.xlu1 %1623 }
 0x8a3   : > { %1678 = vmatpush1.bf16.msra.mxu1 %v1616_v28 }
 0x8a6   : > { %1843 = vmatmul.mubr.msk.bf16.vlgmr.msra.gmra.mrb[12].mxu1 %vm358_vm0, %v1958_v43 }
 0x92e   : > { %v1668_v7 = vpop.f32.mrb[12].mxu0 }
 0x92f   : > { %v1670_v22 = vpop.f32.mrb[13].mxu0  ;;  %v1669_v19 = vadd.f32 %v1668_v7, %v1620_v8 }
 0x930   : > { %v1672_v48 = vpop.f32.mrb[14].mxu0  ;;  %v1671_v33 = vadd.f32 %v1670_v22, %v1620_v8 }
 0x931   : > { %1720 = vst [vmem:[%s323_s24] sm:$0xff] %v1669_v19  ;;  %v1674_v62 = vpop.f32.mrb[15].mxu0  ;;  %v1673_v51 = vadd.f32 %v1672_v48, %v1624_v42 }
 0x932   : > { %1721 = vst [vmem:[%s323_s24 + $0x8] sm:$0xff] %v1671_v33  ;;  %v1675_v41 = vadd.f32 %v1674_v62, %v1624_v42 }
 0x933   : > { %1724 = vst [vmem:[%s323_s24 + $0x20] sm:$0xff] %v1673_v51 }
 0x934   : > { %1725 = vst [vmem:[%s323_s24 + $0x28] sm:$0xff] %v1675_v41 }
 0x979   : > { %v1711_v13 = vpop.f32.mrb[12].mxu1 }
 0x97a   : > { %v1713_v61 = vpop.f32.mrb[13].mxu1  ;;  %v1712_v21 = vadd.f32 %v1711_v13, %v1620_v8 }
 0x97b   : > { %v1715_v16 = vpop.f32.mrb[14].mxu1  ;;  %v1714_v60 = vadd.f32 %v1713_v61, %v1620_v8 }
 0x97c   : > { %1722 = vst [vmem:[%s323_s24 + $0x10] sm:$0xff] %v1712_v21  ;;  %v1717_v40 = vpop.f32.mrb[15].mxu1  ;;  %v1716_v23 = vadd.f32 %v1715_v16, %v1624_v42 }
 0x97d   : > { %1723 = vst [vmem:[%s323_s24 + $0x18] sm:$0xff] %v1714_v60  ;;  %v1718_v11 = vadd.f32 %v1717_v40, %v1624_v42 }
 0x97e   : > { %1726 = vst [vmem:[%s323_s24 + $0x30] sm:$0xff] %v1716_v23 }
 0x97f   : > { %1727 = vst [vmem:[%s323_s24 + $0x38] sm:$0xff] %v1718_v11 }
 0x980   : > { %2060 = shalt.err (!%p2057_p3)
}
 0x981   : > { %s2061_s15 = scalar_lea.hbm %s3099_s25, 1024  ;;  %s2065_s20 = scalar_lea.hbm %s3151_s8, 2048 }
 0x982   : > { %p2062_p5 = scmp.ne.s32.totalorder %s3099_s25, %s2061_s15  ;;  %p2066_p9 = scmp.lt.u32.totalorder %s3099_s25, %s3151_s8 }
 0x983   : > { %p2067_p0 = scmp.lt.u32.totalorder %s2065_s20, %s2061_s15  ;;  %p2069_p6 = scmp.lt.u32.totalorder %s2061_s15, %s3099_s25 }
 0x984   : > { %p2063_p7 = pnand %p2062_p5, %p3185_p11 }
 0x985   : > { %p2068_p2 = por %p2067_p0, %p2066_p9 }
 0x986   : > { %p2064_p8 = pneg %p2063_p7 }
 0x987   : > { %p2070_p12 = por %p2069_p6, %p2068_p2 }
 0x989   : > { %p2071_p13 = pnand %p2070_p12, %p2064_p8 }
 0x98b   : > { %2074 = shalt.err (!%p2071_p13)
}
 0x98c   : > { %s2132_s16 = smov 512   ;;  %s2133_s21 = smov 1024  }
 0x98d   : > { %s2134_s26 = smov 32  }
 0x98e   : > { %1877 = dma.vmem_to_hbm [thread:$0]  (%p3185_p11), %s3094_s12, 1024, %s3099_s25, %s1729_s9, %s2132_s16, %s2133_s21, %s2134_s26  }
 0x98f PF: > { %s1757_s19 = sand.u32 1, %s2101_s27   ;;  %p3186_p4 = scmp.ne.s32.totalorder %s3163_s18, 0 }
 0x990   : > { %p3187_p10 = scmp.ge.s32.totalorder %s2113_s30, 2  ;;  %s1758_s15 = scalar_lea.sflag [#allocation4], %s1757_s19 }
 0x992   : > { %p1884_p1 = pnand %p3187_p10, %p3186_p4 }
 0x994   : > { %2096 = dma.done.wait (!%p1884_p1), %s1758_s15, 1024  }
 0x995   : > { %2098 = vsyncadd (!%p1884_p1), %s1758_s15, 4294966272  ;;  %p21_p3 = scmp.ge.s32.totalorder %s2205_s11, 4   ;;  %s3188_s27 = smov %s2105_s28 }
 0x996   : > { %s3189_s28 = smov %s2109_s29  ;;  %s3190_s29 = smov %s2217_s14 }
 0x997   : > { %s3191_s30 = smov %s2205_s11  ;;  %23 = sbr.rel (!%p21_p3) target bundleno = 5 (0x5), region = 103 }
 0x99e   :  { %1763 = vsyncpa [#allocation3], 1 }
 0x99f   :  { %1765 = vsyncpa [#allocation3 + $0x1], 1 }
 0x9a0   :  { %1766 = vsyncpa [#allocation4], 1 }
 0x9a1   :  { %1768 = vsyncpa [#allocation4 + $0x1], 1 }

</bundles_post_ra>
